<compile_context>
chip_gen: v5e
topology: v5e:2x2
jax: 0.10.0
libtpu: 0.0.40
codegen_flags: <defaults>
</compile_context>

<pallas_src>
import functools

import jax
import jax.numpy as jnp
from jax.experimental import pallas as pl
from jax.experimental.pallas import tpu as pltpu

K_IN = 28 * 28   # 784 input features
K_PAD = 896      # 784 padded up to 7 * 128 lanes
N1, N2 = 512, 256
N3_PAD = 128     # layer-3 width 64 padded to one full lane vreg
N_OUT = 10
N_OUT_PAD = 128  # logits width 10 padded to one full lane vreg
NEG_BIG = -1e30  # pad bias for fake logit columns -> exp() underflows to 0

BM_MAX = 1024    # batch-tile ceiling (x tile 1.75 MiB bf16; total VMEM ~10 MiB)
MXU_ROWS = 256   # don't split tiles below this on multi-TC chips (MXU M fill)


# ----------------------------------------------------------------------------
# Kernel
# ----------------------------------------------------------------------------

def _ann_kernel(x_ref,
                w1_ref, t1_ref,
                w2_ref, t2_ref,
                w3_ref, t3_ref,
                w4_ref, t4_ref,
                o_ref):
    """Fused MLP forward: 3x (matmul -> shift -> ReLU) -> matmul -> softmax."""
    x = x_ref[...]  # (bm, 896) bf16

    # Layer 1: Linear(784->512) with folded bias+BN (in w1/t1)
    h = jnp.dot(x, w1_ref[...], preferred_element_type=jnp.float32) + t1_ref[...]
    h = jnp.maximum(h, 0.0).astype(jnp.bfloat16)

    # Layer 2: Linear(512->256) with folded bias+BN
    h = jnp.dot(h, w2_ref[...], preferred_element_type=jnp.float32) + t2_ref[...]
    h = jnp.maximum(h, 0.0).astype(jnp.bfloat16)

    # Layer 3: Linear(256->64, padded to 128 lanes) with folded bias+BN
    h = jnp.dot(h, w3_ref[...], preferred_element_type=jnp.float32) + t3_ref[...]
    h = jnp.maximum(h, 0.0).astype(jnp.bfloat16)

    # Layer 4: Linear(64->10, padded to 128x128); pad columns carry bias -1e30
    logits = jnp.dot(h, w4_ref[...], preferred_element_type=jnp.float32) + t4_ref[...]

    # Numerically stable softmax over the 128-lane row (pad cols contribute 0)
    m = jnp.max(logits, axis=-1, keepdims=True)
    e = jnp.exp(logits - m)
    denom = jnp.sum(e, axis=-1, keepdims=True)
    o_ref[...] = (e * pl.reciprocal(denom, approx=True)).astype(o_ref.dtype)


# ----------------------------------------------------------------------------
# Tile-size policy
# ----------------------------------------------------------------------------

def _round_up(x, m):
    return (x + m - 1) // m * m


def _detect_num_tensorcores():
    """Best-effort TensorCore-per-chip count (v7x: 2, v5e/v6e: 1)."""
    try:
        info = pltpu.get_tpu_info()
        for name in ("num_cores", "num_tensorcores", "tensor_core_count",
                     "core_count", "num_cores_per_chip"):
            v = getattr(info, name, None)
            if isinstance(v, int) and v >= 1:
                return v
    except Exception:
        pass
    try:
        dev = jax.devices()[0]
        for name in ("num_cores", "core_count"):
            v = getattr(dev, name, None)
            if isinstance(v, int) and v >= 1:
                return v
    except Exception:
        pass
    return 1  # conservative: single TensorCore -> biggest tiles, fewest steps


def _choose_bm(batch, num_cores):
    """Batch-tile selection (perf-review policy).

    * Tiles as large as BM_MAX to amortize the ~0.35 us per-grid-step overhead.
    * Multi-TC chips (v7x): a balanced step count (multiple of num_cores) so both
      cores get equal work, but never shrink a tile below MXU_ROWS(=256) rows.
    * Single-TC chips (v5e/v6e): as few steps as BM_MAX allows (no B//2 clamp).
    * bm = round_up(ceil(B / n_steps), 16) keeps batch padding (Bp - B) small.
    """
    batch = max(int(batch), 1)
    n_steps = pl.cdiv(batch, BM_MAX)
    if num_cores > 1 and batch >= num_cores * MXU_ROWS:
        n_steps = _round_up(max(n_steps, num_cores), num_cores)
        while n_steps > num_cores and pl.cdiv(batch, n_steps) < MXU_ROWS:
            n_steps -= num_cores
    bm = _round_up(pl.cdiv(batch, n_steps), 16)
    return max(16, min(bm, BM_MAX))


# ----------------------------------------------------------------------------
# Forward wrapper (fully jitted: input prep + kernel + output slice)
# ----------------------------------------------------------------------------

@functools.partial(jax.jit, static_argnames=("bm", "input_buffers"))
def _ann_forward_impl(x_nchw, params, *, bm, input_buffers=2):
    B = x_nchw.shape[0]
    Bp = _round_up(B, bm)
    n_steps = Bp // bm
    (w1, t1, w2, t2, w3, t3, w4, t4) = params

    # nn.Flatten(); cast to bf16 BEFORE padding (half the pad bytes), then pad
    # batch B->Bp and features 784->896. All fused inside this jit region.
    x = x_nchw.reshape(B, K_IN).astype(jnp.bfloat16)
    x = jnp.pad(x, ((0, Bp - B), (0, K_PAD - K_IN)))

    def row_spec(n, buffers=2):      # per-batch-tile blocks
        if buffers > 2 and n_steps > buffers and hasattr(pl, "Buffered"):
            try:  # optional deeper input pipeline (v5e follow-up)
                return pl.BlockSpec((bm, n), lambda i: (i, 0),
                                    pipeline_mode=pl.Buffered(buffers))
            except TypeError:
                pass
        return pl.BlockSpec((bm, n), lambda i: (i, 0))

    def full_spec(shape):            # resident weights / shifts (constant block)
        return pl.BlockSpec(shape, lambda i: (0,) * len(shape))

    in_specs = [
        row_spec(K_PAD, input_buffers),
        full_spec((K_PAD, N1)),        full_spec((1, N1)),
        full_spec((N1, N2)),           full_spec((1, N2)),
        full_spec((N2, N3_PAD)),       full_spec((1, N3_PAD)),
        full_spec((N3_PAD, N_OUT_PAD)), full_spec((1, N_OUT_PAD)),
    ]

    out = pl.pallas_call(
        _ann_kernel,
        out_shape=jax.ShapeDtypeStruct((Bp, N_OUT_PAD), jnp.bfloat16),
        grid_spec=pltpu.PrefetchScalarGridSpec(
            num_scalar_prefetch=0,
            grid=(n_steps,),
            in_specs=in_specs,
            out_specs=row_spec(N_OUT_PAD),
        ),
        compiler_params=pltpu.CompilerParams(
            dimension_semantics=("parallel",),
        ),
    )(x, w1, t1, w2, t2, w3, t3, w4, t4)

    # Slice valid rows / real classes and return f32 probabilities.
    return out[:B, :N_OUT].astype(jnp.float32)


def ann_forward(x_nchw, kernel_params, *, bm=None, num_cores=None, input_buffers=2):
    """x_nchw: (B, 1, 28, 28) float32. Returns (B, 10) softmax probabilities."""
    B = x_nchw.shape[0]
    if num_cores is None:
        num_cores = _detect_num_tensorcores()
    if bm is None:
        bm = _choose_bm(B, num_cores)
    bm = max(16, min(_round_up(int(bm), 16), _round_up(B, 16)))
    return _ann_forward_impl(x_nchw, tuple(kernel_params), bm=int(bm),
                             input_buffers=int(input_buffers))


# ----------------------------------------------------------------------------
# Parameter construction / folding / reference
# ----------------------------------------------------------------------------

def make_raw_params(key, eps=1e-5):
    """Synthetic parameters matching the torch module's shapes (inference BN)."""
    del eps
    dims = [(K_IN, N1), (N1, N2), (N2, 64), (64, N_OUT)]
    keys = jax.random.split(key, 16)
    raw = []
    ki = 0
    for li, (fan_in, fan_out) in enumerate(dims):
        bound = 1.0 / jnp.sqrt(fan_in)
        w = jax.random.uniform(keys[ki], (fan_in, fan_out), jnp.float32, -bound, bound); ki += 1
        b = jax.random.uniform(keys[ki], (fan_out,), jnp.float32, -bound, bound); ki += 1
        if li < 3:  # BatchNorm1d after the first three linears
            gamma = 1.0 + 0.1 * jax.random.normal(keys[ki], (fan_out,), jnp.float32); ki += 1
            beta = 0.05 * jax.random.normal(keys[ki], (fan_out,), jnp.float32); ki += 1
            running_mean = jnp.zeros((fan_out,), jnp.float32)
            running_var = jnp.ones((fan_out,), jnp.float32)
            raw.append((w, b, (gamma, beta, running_mean, running_var)))
        else:
            raw.append((w, b))
    return tuple(raw)


def prepare_params(raw, eps=1e-5):
    """Fold bias + inference BN into weights, pad to TPU-friendly shapes, cast bf16."""
    (w1, b1, bn1), (w2, b2, bn2), (w3, b3, bn3), (w4, b4) = raw

    def fold(w, b, bn):
        gamma, beta, mean, var = bn
        s = gamma / jnp.sqrt(var + eps)
        return w * s[None, :], (b - mean) * s + beta

    w1f, t1 = fold(w1, b1, bn1)
    w2f, t2 = fold(w2, b2, bn2)
    w3f, t3 = fold(w3, b3, bn3)

    # Layer 1: pad K 784 -> 896 with zero rows (matches zero-padded input cols).
    w1f = jnp.pad(w1f, ((0, K_PAD - K_IN), (0, 0)))
    # Layer 3: pad output 64 -> 128 with zero cols; shift pads are 0 -> ReLU -> 0.
    w3f = jnp.pad(w3f, ((0, 0), (0, N3_PAD - 64)))
    t3 = jnp.pad(t3, (0, N3_PAD - 64))
    # Layer 4: pad (64,10) -> (128,128); padded input rows are zero activations,
    # padded output cols get bias -1e30 so softmax gives them zero probability.
    w4f = jnp.pad(w4, ((0, N3_PAD - 64), (0, N_OUT_PAD - N_OUT)))
    t4 = jnp.pad(b4, (0, N_OUT_PAD - N_OUT), constant_values=NEG_BIG)

    def bf16(a):
        return a.astype(jnp.bfloat16)

    def vec(a):
        return a.reshape(1, -1).astype(jnp.float32)

    return (bf16(w1f), vec(t1),
            bf16(w2f), vec(t2),
            bf16(w3f), vec(t3),
            bf16(w4f), vec(t4))


def reference_forward(x_nchw, raw, eps=1e-5):
    """Pure-JAX f32 reference of the module's forward (inference-mode BN)."""
    (w1, b1, bn1), (w2, b2, bn2), (w3, b3, bn3), (w4, b4) = raw
    h = x_nchw.reshape(x_nchw.shape[0], -1).astype(jnp.float32)

    def lin_bn_relu(h, w, b, bn):
        gamma, beta, mean, var = bn
        y = h @ w + b
        y = (y - mean) / jnp.sqrt(var + eps) * gamma + beta
        return jnp.maximum(y, 0.0)

    h = lin_bn_relu(h, w1, b1, bn1)
    h = lin_bn_relu(h, w2, b2, bn2)
    h = lin_bn_relu(h, w3, b3, bn3)
    logits = h @ w4 + b4
    return jax.nn.softmax(logits, axis=1)


if __name__ == "__main__":
    key = jax.random.PRNGKey(0)
    k_x, k_p = jax.random.split(key)

    B = 32  # small test batch (MNIST-like NCHW input)
    x = jax.random.normal(k_x, (B, 1, 28, 28), jnp.float32)
    raw = make_raw_params(k_p)
    kernel_params = prepare_params(raw)

    # Default policy (auto bm / num_cores): single large tile for this small batch.
    out = ann_forward(x, kernel_params)
    out = jax.block_until_ready(out)

    ref = reference_forward(x, raw)
    assert out.shape == (B, 10)
    # Probabilities sum to ~1 (approx reciprocal + bf16 store -> loose tolerance).
    assert jnp.allclose(jnp.sum(out, axis=1), 1.0, atol=1e-2)
    # bf16 matmuls / bf16 output vs f32 reference.
    err = float(jnp.max(jnp.abs(out - ref)))
    assert err < 2.5e-2, err

    # Also exercise the multi-grid-step path (explicit small tile -> 2 steps).
    out2 = jax.block_until_ready(ann_forward(x, kernel_params, bm=16))
    assert out2.shape == (B, 10)
    assert jnp.allclose(out2, out, atol=1e-2)

    print("KERNEL_OK")
</pallas_src>

<mosaic_0001>
module attributes {stable_mosaic.version = 11 : i64} {
  func.func @_ann_kernel(%arg0: i32, %arg1: memref<32x896xbf16, #tpu.memory_space<vmem>>, %arg2: memref<896x512xbf16, #tpu.memory_space<vmem>>, %arg3: memref<1x512xf32, #tpu.memory_space<vmem>>, %arg4: memref<512x256xbf16, #tpu.memory_space<vmem>>, %arg5: memref<1x256xf32, #tpu.memory_space<vmem>>, %arg6: memref<256x128xbf16, #tpu.memory_space<vmem>>, %arg7: memref<1x128xf32, #tpu.memory_space<vmem>>, %arg8: memref<128x128xbf16, #tpu.memory_space<vmem>>, %arg9: memref<1x128xf32, #tpu.memory_space<vmem>>, %arg10: memref<32x128xbf16, #tpu.memory_space<vmem>>) attributes {dimension_semantics = [#tpu.dimension_semantics<parallel>], iteration_bounds = array<i64: 1>, scalar_prefetch = 0 : i64, scratch_operands = 0 : i64, tpu.core_type = #tpu.core_type<tc>, window_params = [{transform_indices = @transform_0, window_bounds = array<i64: 32, 896>}, {pipeline_mode = #tpu.pipeline_mode<synchronous>, transform_indices = @transform_1, window_bounds = array<i64: 896, 512>}, {pipeline_mode = #tpu.pipeline_mode<synchronous>, transform_indices = @transform_2, window_bounds = array<i64: 1, 512>}, {pipeline_mode = #tpu.pipeline_mode<synchronous>, transform_indices = @transform_3, window_bounds = array<i64: 512, 256>}, {pipeline_mode = #tpu.pipeline_mode<synchronous>, transform_indices = @transform_4, window_bounds = array<i64: 1, 256>}, {pipeline_mode = #tpu.pipeline_mode<synchronous>, transform_indices = @transform_5, window_bounds = array<i64: 256, 128>}, {pipeline_mode = #tpu.pipeline_mode<synchronous>, transform_indices = @transform_6, window_bounds = array<i64: 1, 128>}, {pipeline_mode = #tpu.pipeline_mode<synchronous>, transform_indices = @transform_7, window_bounds = array<i64: 128, 128>}, {pipeline_mode = #tpu.pipeline_mode<synchronous>, transform_indices = @transform_8, window_bounds = array<i64: 1, 128>}, {transform_indices = @transform_9, window_bounds = array<i64: 32, 128>}]} {
    %c0 = arith.constant 0 : index
    %c0_0 = arith.constant 0 : index
    %0 = vector.load %arg1[%c0, %c0_0] : memref<32x896xbf16, #tpu.memory_space<vmem>>, vector<32x896xbf16>
    %c0_1 = arith.constant 0 : index
    %c0_2 = arith.constant 0 : index
    %1 = vector.load %arg2[%c0_1, %c0_2] : memref<896x512xbf16, #tpu.memory_space<vmem>>, vector<896x512xbf16>
    %cst = arith.constant dense<0.000000e+00> : vector<32x512xf32>
    %2 = tpu.matmul %0, %1, %cst {dimension_numbers = #tpu.dot_dimension_numbers<[1], [0], [0], [1], [0, 0, 1, 1], [], []>} : vector<32x896xbf16>, vector<896x512xbf16>, vector<32x512xf32> -> vector<32x512xf32>
    %c0_3 = arith.constant 0 : index
    %c0_4 = arith.constant 0 : index
    %3 = vector.load %arg3[%c0_3, %c0_4] : memref<1x512xf32, #tpu.memory_space<vmem>>, vector<1x512xf32>
    %4 = vector.broadcast %3 : vector<1x512xf32> to vector<32x512xf32>
    %5 = arith.addf %2, %4 : vector<32x512xf32>
    %cst_5 = arith.constant 0.000000e+00 : f32
    %6 = vector.broadcast %cst_5 : f32 to vector<32x512xf32>
    %7 = arith.maximumf %5, %6 : vector<32x512xf32>
    %8 = arith.truncf %7 : vector<32x512xf32> to vector<32x512xbf16>
    %c0_6 = arith.constant 0 : index
    %c0_7 = arith.constant 0 : index
    %9 = vector.load %arg4[%c0_6, %c0_7] : memref<512x256xbf16, #tpu.memory_space<vmem>>, vector<512x256xbf16>
    %cst_8 = arith.constant dense<0.000000e+00> : vector<32x256xf32>
    %10 = tpu.matmul %8, %9, %cst_8 {dimension_numbers = #tpu.dot_dimension_numbers<[1], [0], [0], [1], [0, 0, 1, 1], [], []>} : vector<32x512xbf16>, vector<512x256xbf16>, vector<32x256xf32> -> vector<32x256xf32>
    %c0_9 = arith.constant 0 : index
    %c0_10 = arith.constant 0 : index
    %11 = vector.load %arg5[%c0_9, %c0_10] : memref<1x256xf32, #tpu.memory_space<vmem>>, vector<1x256xf32>
    %12 = vector.broadcast %11 : vector<1x256xf32> to vector<32x256xf32>
    %13 = arith.addf %10, %12 : vector<32x256xf32>
    %cst_11 = arith.constant 0.000000e+00 : f32
    %14 = vector.broadcast %cst_11 : f32 to vector<32x256xf32>
    %15 = arith.maximumf %13, %14 : vector<32x256xf32>
    %16 = arith.truncf %15 : vector<32x256xf32> to vector<32x256xbf16>
    %c0_12 = arith.constant 0 : index
    %c0_13 = arith.constant 0 : index
    %17 = vector.load %arg6[%c0_12, %c0_13] : memref<256x128xbf16, #tpu.memory_space<vmem>>, vector<256x128xbf16>
    %cst_14 = arith.constant dense<0.000000e+00> : vector<32x128xf32>
    %18 = tpu.matmul %16, %17, %cst_14 {dimension_numbers = #tpu.dot_dimension_numbers<[1], [0], [0], [1], [0, 0, 1, 1], [], []>} : vector<32x256xbf16>, vector<256x128xbf16>, vector<32x128xf32> -> vector<32x128xf32>
    %c0_15 = arith.constant 0 : index
    %c0_16 = arith.constant 0 : index
    %19 = vector.load %arg7[%c0_15, %c0_16] : memref<1x128xf32, #tpu.memory_space<vmem>>, vector<1x128xf32>
    %20 = vector.broadcast %19 : vector<1x128xf32> to vector<32x128xf32>
    %21 = arith.addf %18, %20 : vector<32x128xf32>
    %cst_17 = arith.constant 0.000000e+00 : f32
    %22 = vector.broadcast %cst_17 : f32 to vector<32x128xf32>
    %23 = arith.maximumf %21, %22 : vector<32x128xf32>
    %24 = arith.truncf %23 : vector<32x128xf32> to vector<32x128xbf16>
    %c0_18 = arith.constant 0 : index
    %c0_19 = arith.constant 0 : index
    %25 = vector.load %arg8[%c0_18, %c0_19] : memref<128x128xbf16, #tpu.memory_space<vmem>>, vector<128x128xbf16>
    %cst_20 = arith.constant dense<0.000000e+00> : vector<32x128xf32>
    %26 = tpu.matmul %24, %25, %cst_20 {dimension_numbers = #tpu.dot_dimension_numbers<[1], [0], [0], [1], [0, 0, 1, 1], [], []>} : vector<32x128xbf16>, vector<128x128xbf16>, vector<32x128xf32> -> vector<32x128xf32>
    %c0_21 = arith.constant 0 : index
    %c0_22 = arith.constant 0 : index
    %27 = vector.load %arg9[%c0_21, %c0_22] : memref<1x128xf32, #tpu.memory_space<vmem>>, vector<1x128xf32>
    %28 = vector.broadcast %27 : vector<1x128xf32> to vector<32x128xf32>
    %29 = arith.addf %26, %28 : vector<32x128xf32>
    %cst_23 = arith.constant dense<0xFF800000> : vector<32xf32>
    %30 = vector.multi_reduction <maximumf>, %29, %cst_23 [1] : vector<32x128xf32> to vector<32xf32>
    %31 = vector.shape_cast %30 : vector<32xf32> to vector<32x1xf32>
    %32 = vector.broadcast %31 : vector<32x1xf32> to vector<32x128xf32>
    %33 = arith.subf %29, %32 : vector<32x128xf32>
    %34 = math.exp %33 : vector<32x128xf32>
    %cst_24 = arith.constant dense<0.000000e+00> : vector<32xf32>
    %35 = vector.multi_reduction <add>, %34, %cst_24 [1] : vector<32x128xf32> to vector<32xf32>
    %36 = vector.shape_cast %35 : vector<32xf32> to vector<32x1xf32>
    %37 = tpu.reciprocal %36 {approx = true} : vector<32x1xf32> -> vector<32x1xf32>
    %38 = vector.broadcast %37 : vector<32x1xf32> to vector<32x128xf32>
    %39 = arith.mulf %34, %38 : vector<32x128xf32>
    %40 = arith.truncf %39 : vector<32x128xf32> to vector<32x128xbf16>
    %c0_25 = arith.constant 0 : index
    %c0_26 = arith.constant 0 : index
    %41 = vector.load %arg10[%c0_25, %c0_26] : memref<32x128xbf16, #tpu.memory_space<vmem>>, vector<32x128xbf16>
    tpu.vector_store %arg10[%c0_25, %c0_26], %40 {strides = array<i32>} : memref<32x128xbf16, #tpu.memory_space<vmem>>, vector<32x128xbf16>,
    return
  }
  func.func @transform_0(%arg0: i32) -> (i32, i32) {
    %c0_i32 = arith.constant 0 : i32
    %c0_i32_0 = arith.constant 0 : i32
    return %arg0, %c0_i32 : i32, i32
  }
  func.func @transform_1(%arg0: i32) -> (i32, i32) {
    %c0_i32 = arith.constant 0 : i32
    %c0_i32_0 = arith.constant 0 : i32
    %c0_i32_1 = arith.constant 0 : i32
    return %c0_i32, %c0_i32_0 : i32, i32
  }
  func.func @transform_2(%arg0: i32) -> (i32, i32) {
    %c0_i32 = arith.constant 0 : i32
    %c0_i32_0 = arith.constant 0 : i32
    %c0_i32_1 = arith.constant 0 : i32
    return %c0_i32, %c0_i32_0 : i32, i32
  }
  func.func @transform_3(%arg0: i32) -> (i32, i32) {
    %c0_i32 = arith.constant 0 : i32
    %c0_i32_0 = arith.constant 0 : i32
    %c0_i32_1 = arith.constant 0 : i32
    return %c0_i32, %c0_i32_0 : i32, i32
  }
  func.func @transform_4(%arg0: i32) -> (i32, i32) {
    %c0_i32 = arith.constant 0 : i32
    %c0_i32_0 = arith.constant 0 : i32
    %c0_i32_1 = arith.constant 0 : i32
    return %c0_i32, %c0_i32_0 : i32, i32
  }
  func.func @transform_5(%arg0: i32) -> (i32, i32) {
    %c0_i32 = arith.constant 0 : i32
    %c0_i32_0 = arith.constant 0 : i32
    %c0_i32_1 = arith.constant 0 : i32
    return %c0_i32, %c0_i32_0 : i32, i32
  }
  func.func @transform_6(%arg0: i32) -> (i32, i32) {
    %c0_i32 = arith.constant 0 : i32
    %c0_i32_0 = arith.constant 0 : i32
    %c0_i32_1 = arith.constant 0 : i32
    return %c0_i32, %c0_i32_0 : i32, i32
  }
  func.func @transform_7(%arg0: i32) -> (i32, i32) {
    %c0_i32 = arith.constant 0 : i32
    %c0_i32_0 = arith.constant 0 : i32
    %c0_i32_1 = arith.constant 0 : i32
    return %c0_i32, %c0_i32_0 : i32, i32
  }
  func.func @transform_8(%arg0: i32) -> (i32, i32) {
    %c0_i32 = arith.constant 0 : i32
    %c0_i32_0 = arith.constant 0 : i32
    %c0_i32_1 = arith.constant 0 : i32
    return %c0_i32, %c0_i32_0 : i32, i32
  }
  func.func @transform_9(%arg0: i32) -> (i32, i32) {
    %c0_i32 = arith.constant 0 : i32
    %c0_i32_0 = arith.constant 0 : i32
    return %arg0, %c0_i32 : i32, i32
  }
}

</mosaic_0001>

<bundles_post_ra>
// kernel: _ann_forward_impl.1
= control target key start
LH: loop header
LB: loop body
LE: loop exit
PB: predicated region body
PF: predicated region fallthrough
CT: control target
= control target key end

     0   :  { %s6793_s1 = inlined_call_operand.vmem [shape: bf16[896,512], index: 1, kind: input, shape index: {}]   ;;  %s6794_s0 = inlined_call_operand.vmem [shape: bf16[32,896], index: 0, kind: input, shape index: {}]   ;;  %s6795_s2 = inlined_call_operand.vmem [shape: f32[1,512], index: 2, kind: input, shape index: {}]   ;;  %s6796_s3 = inlined_call_operand.vmem [shape: bf16[512,256], index: 3, kind: input, shape index: {}]   ;;  %s6797_s6 = inlined_call_operand.vmem [shape: f32[1,128], index: 6, kind: input, shape index: {}]   ;;  %s6798_s5 = inlined_call_operand.vmem [shape: bf16[256,128], index: 5, kind: input, shape index: {}]   ;;  %s6799_s4 = inlined_call_operand.vmem [shape: f32[1,256], index: 4, kind: input, shape index: {}]   ;;  %s6800_s8 = inlined_call_operand.vmem [shape: f32[1,128], index: 8, kind: input, shape index: {}]   ;;  %s6801_s7 = inlined_call_operand.vmem [shape: bf16[128,128], index: 7, kind: input, shape index: {}]   ;;  %s6802_s9 = inlined_call_operand.vmem [shape: bf16[32,128], index: 9, kind: output, shape index: {}]  }
   0x1   :  { %v3065_v0 = vld [vmem:[%s6793_s1 + $0xe0] sm:$0xf]  ;;  %v4243_v1 = vld [vmem:[%s6793_s1 + $0xec] sm:$0xf0] }
   0x2   :  { %v3193_v2 = vld [vmem:[%s6793_s1 + $0x1e0] sm:$0xf]  ;;  %v3066_v3 = vor.u32 %v4243_v1, %v3065_v0  ;;  %v4275_v4 = vld [vmem:[%s6793_s1 + $0x1ec] sm:$0xf0] }
   0x3   :  { %v3321_v5 = vld [vmem:[%s6793_s1 + $0x2e0] sm:$0xf]  ;;  %v4307_v6 = vld [vmem:[%s6793_s1 + $0x2ec] sm:$0xf0]  ;;  %v3194_v7 = vor.u32 %v4275_v4, %v3193_v2 }
   0x4   :  { %v3322_v8 = vor.u32 %v4307_v6, %v3321_v5  ;;  %v3449_v9 = vld [vmem:[%s6793_s1 + $0x3e0] sm:$0xf]  ;;  %v4339_v10 = vld [vmem:[%s6793_s1 + $0x3ec] sm:$0xf0]  ;;  %1474 = vmatpush.bf16.msra.mxu0 %v3066_v3 }
   0x5   :  { %v3049_v11 = vld [vmem:[%s6793_s1 + $0xc0] sm:$0xf]  ;;  %v3450_v12 = vor.u32 %v4339_v10, %v3449_v9  ;;  %v4239_v13 = vld [vmem:[%s6793_s1 + $0xcc] sm:$0xf0]  ;;  %1493 = vmatpush.bf16.msra.mxu1 %v3194_v7 }
   0x6   :  { %v3177_v14 = vld [vmem:[%s6793_s1 + $0x1c0] sm:$0xf]  ;;  %v4271_v15 = vld [vmem:[%s6793_s1 + $0x1cc] sm:$0xf0]  ;;  %1512 = vmatpush.bf16.msra.mxu2 %v3322_v8  ;;  %v3050_v16 = vor.u32 %v4239_v13, %v3049_v11 }
   0x7   :  { %v3178_v17 = vor.u32 %v4271_v15, %v3177_v14  ;;  %v3305_v18 = vld [vmem:[%s6793_s1 + $0x2c0] sm:$0xf]  ;;  %v4303_v19 = vld [vmem:[%s6793_s1 + $0x2cc] sm:$0xf0]  ;;  %1531 = vmatpush.bf16.msra.mxu3 %v3450_v12 }
   0x8   :  { %v3433_v20 = vld [vmem:[%s6793_s1 + $0x3c0] sm:$0xf]  ;;  %v3306_v21 = vor.u32 %v4303_v19, %v3305_v18  ;;  %v4335_v22 = vld [vmem:[%s6793_s1 + $0x3cc] sm:$0xf0]  ;;  %1475 = vmatpush.bf16.msra.mxu0 %v3050_v16 }
   0x9   :  { %v3033_v23 = vld [vmem:[%s6793_s1 + $0xa0] sm:$0xf]  ;;  %v4235_v24 = vld [vmem:[%s6793_s1 + $0xac] sm:$0xf0]  ;;  %v3434_v25 = vor.u32 %v4335_v22, %v3433_v20  ;;  %1494 = vmatpush.bf16.msra.mxu1 %v3178_v17 }
   0xa   :  { %v3161_v26 = vld [vmem:[%s6793_s1 + $0x1a0] sm:$0xf]  ;;  %v4267_v27 = vld [vmem:[%s6793_s1 + $0x1ac] sm:$0xf0]  ;;  %v3034_v29 = vor.u32 %v4235_v24, %v3033_v23  ;;  %1513 = vmatpush.bf16.msra.mxu2 %v3306_v21 }
   0xb   :  { %v3289_v28 = vld [vmem:[%s6793_s1 + $0x2a0] sm:$0xf]  ;;  %v4299_v30 = vld [vmem:[%s6793_s1 + $0x2ac] sm:$0xf0]  ;;  %v3162_v33 = vor.u32 %v4267_v27, %v3161_v26  ;;  %1532 = vmatpush.bf16.msra.mxu3 %v3434_v25 }
   0xc   :  { %v3417_v31 = vld [vmem:[%s6793_s1 + $0x3a0] sm:$0xf]  ;;  %v4331_v32 = vld [vmem:[%s6793_s1 + $0x3ac] sm:$0xf0]  ;;  %v3290_v34 = vor.u32 %v4299_v30, %v3289_v28  ;;  %1476 = vmatpush.bf16.msra.mxu0 %v3034_v29  ;;  %v4202_v29 = vld [vmem:[%s6794_s0 + $0x18] sm:$0xf0] }
   0xd   :  { %v3017_v35 = vld [vmem:[%s6793_s1 + $0x80] sm:$0xf]  ;;  %v4231_v36 = vld [vmem:[%s6793_s1 + $0x8c] sm:$0xf0]  ;;  %v3418_v38 = vor.u32 %v4331_v32, %v3417_v31  ;;  %1495 = vmatpush.bf16.msra.mxu1 %v3162_v33  ;;  %v4199_v30 = vld [vmem:[%s6794_s0 + $0x4] sm:$0xf] }
   0xe   :  { %v3145_v37 = vld [vmem:[%s6793_s1 + $0x180] sm:$0xf]  ;;  %v4263_v39 = vld [vmem:[%s6793_s1 + $0x18c] sm:$0xf0]  ;;  %v3018_v44 = vor.u32 %v4231_v36, %v3017_v35  ;;  %1514 = vmatpush.bf16.msra.mxu2 %v3290_v34  ;;  %v2905_v35 = vld [vmem:[%s6794_s0 + $0x8] sm:$0xf] }
   0xf   :  { %v3273_v40 = vld [vmem:[%s6793_s1 + $0x280] sm:$0xf]  ;;  %v4295_v41 = vld [vmem:[%s6793_s1 + $0x28c] sm:$0xf0]  ;;  %v3146_v45 = vor.u32 %v4263_v39, %v3145_v37  ;;  %1533 = vmatpush.bf16.msra.mxu3 %v3418_v38 }
  0x10   :  { %v3401_v42 = vld [vmem:[%s6793_s1 + $0x380] sm:$0xf]  ;;  %v4327_v43 = vld [vmem:[%s6793_s1 + $0x38c] sm:$0xf0]  ;;  %v3274_v46 = vor.u32 %v4295_v41, %v3273_v40  ;;  %1477 = vmatpush.bf16.msra.mxu0 %v3018_v44  ;;  %v4203_v40 = vld [vmem:[%s6794_s0 + $0x20] sm:$0xf0] }
  0x11   :  { %v3001_v47 = vld [vmem:[%s6793_s1 + $0x60] sm:$0xf]  ;;  %v4227_v48 = vld [vmem:[%s6793_s1 + $0x6c] sm:$0xf0]  ;;  %v3402_v50 = vor.u32 %v4327_v43, %v3401_v42  ;;  %1496 = vmatpush.bf16.msra.mxu1 %v3146_v45  ;;  %v4200_v41 = vld [vmem:[%s6794_s0 + $0xc] sm:$0xf] }
  0x12   :  { %v3129_v49 = vld [vmem:[%s6793_s1 + $0x160] sm:$0xf]  ;;  %v4259_v51 = vld [vmem:[%s6793_s1 + $0x16c] sm:$0xf0]  ;;  %v3002_v56 = vor.u32 %v4227_v48, %v3001_v47  ;;  %1515 = vmatpush.bf16.msra.mxu2 %v3274_v46  ;;  %v2907_v42 = vld [vmem:[%s6794_s0 + $0x24] sm:$0xf0] }
  0x13   :  { %v3257_v52 = vld [vmem:[%s6793_s1 + $0x260] sm:$0xf]  ;;  %v4291_v53 = vld [vmem:[%s6793_s1 + $0x26c] sm:$0xf0]  ;;  %v3130_v57 = vor.u32 %v4259_v51, %v3129_v49  ;;  %1534 = vmatpush.bf16.msra.mxu3 %v3402_v50  ;;  %v4241_v47 = vld [vmem:[%s6793_s1 + $0xe4] sm:$0xf] }
  0x14   :  { %v3385_v54 = vld [vmem:[%s6793_s1 + $0x360] sm:$0xf]  ;;  %v4323_v55 = vld [vmem:[%s6793_s1 + $0x36c] sm:$0xf0]  ;;  %v3258_v58 = vor.u32 %v4291_v53, %v3257_v52  ;;  %1478 = vmatpush.bf16.msra.mxu0 %v3002_v56  ;;  %v3067_v50 = vld [vmem:[%s6793_s1 + $0xf0] sm:$0xf0] }
  0x15   :  { %v2985_v59 = vld [vmem:[%s6793_s1 + $0x40] sm:$0xf]  ;;  %v4223_v60 = vld [vmem:[%s6793_s1 + $0x4c] sm:$0xf0]  ;;  %v3386_v62 = vor.u32 %v4323_v55, %v3385_v54  ;;  %1497 = vmatpush.bf16.msra.mxu1 %v3130_v57  ;;  %v4863_v54 = vor.u32 %v4203_v40, %v2905_v35  ;;  %v4871_v57 = vor.u32 %v4200_v41, %v2907_v42 }
  0x16   :  { %v3113_v61 = vld [vmem:[%s6793_s1 + $0x140] sm:$0xf]  ;;  %v4255_v63 = vld [vmem:[%s6793_s1 + $0x14c] sm:$0xf0]  ;;  %v2986_v4 = vor.u32 %v4223_v60, %v2985_v59  ;;  %1516 = vmatpush.bf16.msra.mxu2 %v3258_v58  ;;  %v3070_v59 = vor.u32 %v4241_v47, %v3067_v50 }
  0x17   :  { %v3241_v0 = vld [vmem:[%s6793_s1 + $0x240] sm:$0xf]  ;;  %v4287_v1 = vld [vmem:[%s6793_s1 + $0x24c] sm:$0xf0]  ;;  %v3114_v5 = vor.u32 %v4255_v63, %v3113_v61  ;;  %1535 = vmatpush.bf16.msra.mxu3 %v3386_v62  ;;  %v4237_v63 = vld [vmem:[%s6793_s1 + $0xc4] sm:$0xf] }
  0x18   :  { %v3369_v2 = vld [vmem:[%s6793_s1 + $0x340] sm:$0xf]  ;;  %v4319_v3 = vld [vmem:[%s6793_s1 + $0x34c] sm:$0xf0]  ;;  %v3242_v6 = vor.u32 %v4287_v1, %v3241_v0  ;;  %1479 = vmatpush.bf16.msra.mxu0 %v2986_v4  ;;  %v3051_v1 = vld [vmem:[%s6793_s1 + $0xd0] sm:$0xf0] }
  0x19   :  { %v2969_v7 = vld [vmem:[%s6793_s1 + $0x20] sm:$0xf]  ;;  %v4219_v8 = vld [vmem:[%s6793_s1 + $0x2c] sm:$0xf0]  ;;  %v3370_v10 = vor.u32 %v4319_v3, %v3369_v2  ;;  %1498 = vmatpush.bf16.msra.mxu1 %v3114_v5 }
  0x1a   :  { %v3097_v9 = vld [vmem:[%s6793_s1 + $0x120] sm:$0xf]  ;;  %v4251_v11 = vld [vmem:[%s6793_s1 + $0x12c] sm:$0xf0]  ;;  %v2970_v17 = vor.u32 %v4219_v8, %v2969_v7  ;;  %1517 = vmatpush.bf16.msra.mxu2 %v3242_v6  ;;  %v3054_v7 = vor.u32 %v4237_v63, %v3051_v1  ;;  %v4221_v63 = vld [vmem:[%s6793_s1 + $0x44] sm:$0xf] }
  0x1b   :  { %v3225_v12 = vld [vmem:[%s6793_s1 + $0x220] sm:$0xf]  ;;  %v4283_v13 = vld [vmem:[%s6793_s1 + $0x22c] sm:$0xf0]  ;;  %v3098_v21 = vor.u32 %v4251_v11, %v3097_v9  ;;  %1536 = vmatpush.bf16.msra.mxu3 %v3370_v10  ;;  %v4233_v11 = vld [vmem:[%s6793_s1 + $0xa4] sm:$0xf] }
  0x1c   :  { %v3353_v14 = vld [vmem:[%s6793_s1 + $0x320] sm:$0xf]  ;;  %v4315_v15 = vld [vmem:[%s6793_s1 + $0x32c] sm:$0xf0]  ;;  %v3226_v22 = vor.u32 %v4283_v13, %v3225_v12  ;;  %1480 = vmatpush.bf16.msra.mxu0 %v2970_v17  ;;  %v3035_v13 = vld [vmem:[%s6793_s1 + $0xb0] sm:$0xf0] }
  0x1d   :  { %v2953_v16 = vld [vmem:[%s6793_s1] sm:$0xf]  ;;  %v4215_v18 = vld [vmem:[%s6793_s1 + $0xc] sm:$0xf0]  ;;  %v3354_v26 = vor.u32 %v4315_v15, %v3353_v14  ;;  %1499 = vmatpush.bf16.msra.mxu1 %v3098_v21  ;;  %v4229_v21 = vld [vmem:[%s6793_s1 + $0x84] sm:$0xf] }
  0x1e   :  { %v3081_v19 = vld [vmem:[%s6793_s1 + $0x100] sm:$0xf]  ;;  %v4247_v20 = vld [vmem:[%s6793_s1 + $0x10c] sm:$0xf0]  ;;  %v2954_v34 = vor.u32 %v4215_v18, %v2953_v16  ;;  %1518 = vmatpush.bf16.msra.mxu2 %v3226_v22  ;;  %v3038_v22 = vor.u32 %v4233_v11, %v3035_v13  ;;  %v2987_v1 = vld [vmem:[%s6793_s1 + $0x50] sm:$0xf0] }
  0x1f   :  { %v3209_v23 = vld [vmem:[%s6793_s1 + $0x200] sm:$0xf]  ;;  %v4279_v24 = vld [vmem:[%s6793_s1 + $0x20c] sm:$0xf0]  ;;  %v3082_v38 = vor.u32 %v4247_v20, %v3081_v19  ;;  %1537 = vmatpush.bf16.msra.mxu3 %v3354_v26  ;;  %v4209_v26 = vld [vmem:[%s6794_s0 + $0x50] sm:$0xf0] }
  0x20   :  { %v3337_v25 = vld [vmem:[%s6793_s1 + $0x300] sm:$0xf]  ;;  %v4311_v27 = vld [vmem:[%s6793_s1 + $0x30c] sm:$0xf0]  ;;  %v3210_v39 = vor.u32 %v4279_v24, %v3209_v23  ;;  %1481 = vmatpush.bf16.msra.mxu0 %v2954_v34  ;;  %v3019_v24 = vld [vmem:[%s6793_s1 + $0x90] sm:$0xf0] }
  0x21   :  { %v2897_v28 = vld [vmem:[%s6794_s0] sm:$0xf]  ;;  %v4435_v33 = vld [vmem:[%s6793_s1 + $0x6ec] sm:$0xf0]  ;;  %v3338_v43 = vor.u32 %v4311_v27, %v3337_v25  ;;  %1500 = vmatpush.bf16.msra.mxu1 %v3082_v38  ;;  %v2925_v25 = vld [vmem:[%s6794_s0 + $0x38] sm:$0xf] }
  0x22   :  { %v2899_v31 = vld [vmem:[%s6794_s0 + $0x1c] sm:$0xf0]  ;;  %v4403_v37 = vld [vmem:[%s6793_s1 + $0x5ec] sm:$0xf0]  ;;  %v4850_v48 = vor.u32 %v4202_v29, %v2897_v28  ;;  %1519 = vmatpush.bf16.msra.mxu2 %v3210_v39  ;;  %v4206_v28 = vld [vmem:[%s6794_s0 + $0x3c] sm:$0xf]  ;;  %v3022_v39 = vor.u32 %v4229_v21, %v3019_v24 }
  0x23   :  { %v3833_v32 = vld [vmem:[%s6793_s1 + $0x6e0] sm:$0xf]  ;;  %v4371_v46 = vld [vmem:[%s6793_s1 + $0x4ec] sm:$0xf0]  ;;  %v4861_v53 = vor.u32 %v4199_v30, %v2899_v31  ;;  %1538 = vmatpush.bf16.msra.mxu3 %v3338_v43  ;;  %v2927_v29 = vld [vmem:[%s6794_s0 + $0x54] sm:$0xf0] }
  0x24   :  { %v3705_v36 = vld [vmem:[%s6793_s1 + $0x5e0] sm:$0xf]  ;;  %v3834_v44 = vor.u32 %v4435_v33, %v3833_v32  ;;  %v4431_v52 = vld [vmem:[%s6793_s1 + $0x6cc] sm:$0xf0]  ;;  %1482 = vmatmul.bf16.vlgmr.msra.gmra.mxu0 %v4850_v48  ;;  %v4225_v43 = vld [vmem:[%s6793_s1 + $0x64] sm:$0xf]  ;;  %v4993_v50 = vor.u32 %v4206_v28, %v2927_v29 }
  0x25   :  { %v3577_v45 = vld [vmem:[%s6793_s1 + $0x4e0] sm:$0xf]  ;;  %v3706_v49 = vor.u32 %v4403_v37, %v3705_v36  ;;  %v4399_v56 = vld [vmem:[%s6793_s1 + $0x5cc] sm:$0xf0]  ;;  %1501 = vmatmul.bf16.vlgmr.msra.gmra.mxu1 %v4861_v53  ;;  %1520 = vmatmul.bf16.vlgmr.msra.gmra.mxu2 %v4863_v54  ;;  %v4210_v36 = vld [vmem:[%s6794_s0 + $0x58] sm:$0xf0] }
  0x26   :  { %v3817_v51 = vld [vmem:[%s6793_s1 + $0x6c0] sm:$0xf]  ;;  %v3578_v58 = vor.u32 %v4371_v46, %v3577_v45  ;;  %1588 = vmatpush.bf16.msrb.mxu2 %v3834_v44  ;;  %v4367_v62 = vld [vmem:[%s6793_s1 + $0x4cc] sm:$0xf0]  ;;  %1539 = vmatmul.bf16.vlgmr.msra.gmra.mxu3 %v4871_v57  ;;  %v4207_v37 = vld [vmem:[%s6794_s0 + $0x44] sm:$0xf]  ;;  %v4982_v44 = vor.u32 %v4209_v26, %v2925_v25 }
  0x27   :  { %v3689_v55 = vld [vmem:[%s6793_s1 + $0x5c0] sm:$0xf]  ;;  %v3818_v60 = vor.u32 %v4431_v52, %v3817_v51  ;;  %1569 = vmatpush.bf16.msrb.mxu1 %v3706_v49  ;;  %v4427_v3 = vld [vmem:[%s6793_s1 + $0x6ac] sm:$0xf0]  ;;  %1607 = vmatpush.bf16.msrb.mxu3 %v3070_v59  ;;  %v3003_v46 = vld [vmem:[%s6793_s1 + $0x70] sm:$0xf0] }
  0x28   :  { %v3561_v61 = vld [vmem:[%s6793_s1 + $0x4c0] sm:$0xf]  ;;  %v3690_v0 = vor.u32 %v4399_v56, %v3689_v55  ;;  %v4395_v5 = vld [vmem:[%s6793_s1 + $0x5ac] sm:$0xf0]  ;;  %1550 = vmatpush.bf16.msrb.mxu0 %v3578_v58  ;;  %v3006_v59 = vor.u32 %v4225_v43, %v3003_v46  ;;  %v4217_v11 = vld [vmem:[%s6793_s1 + $0x24] sm:$0xf] }
  0x29   :  { %v3801_v2 = vld [vmem:[%s6793_s1 + $0x6a0] sm:$0xf]  ;;  %v3562_v6 = vor.u32 %v4367_v62, %v3561_v61  ;;  %v4363_v10 = vld [vmem:[%s6793_s1 + $0x4ac] sm:$0xf0]  ;;  %v2955_v28 = vld [vmem:[%s6793_s1 + $0x10] sm:$0xf0] }
  0x2a   :  { %v3673_v4 = vld [vmem:[%s6793_s1 + $0x5a0] sm:$0xf]  ;;  %1589 = vmatpush.bf16.msrb.mxu2 %v3818_v60  ;;  %v3802_v8 = vor.u32 %v4427_v3, %v3801_v2  ;;  %v4423_v15 = vld [vmem:[%s6793_s1 + $0x68c] sm:$0xf0]  ;;  %v2921_v43 = vld [vmem:[%s6794_s0 + $0x18] sm:$0xf] }
  0x2b   :  { %v3545_v9 = vld [vmem:[%s6793_s1 + $0x4a0] sm:$0xf]  ;;  %1570 = vmatpush.bf16.msrb.mxu1 %v3690_v0  ;;  %v3674_v12 = vor.u32 %v4395_v5, %v3673_v4  ;;  %v4391_v17 = vld [vmem:[%s6793_s1 + $0x58c] sm:$0xf0]  ;;  %1608 = vmatpush.bf16.msrb.mxu3 %v3054_v7  ;;  %v4205_v46 = vld [vmem:[%s6794_s0 + $0x30] sm:$0xf0] }
  0x2c   :  { %v3785_v14 = vld [vmem:[%s6793_s1 + $0x680] sm:$0xf]  ;;  %1551 = vmatpush.bf16.msrb.mxu0 %v3562_v6  ;;  %v3546_v18 = vor.u32 %v4363_v10, %v3545_v9  ;;  %v4359_v20 = vld [vmem:[%s6793_s1 + $0x48c] sm:$0xf0] }
  0x2d   :  { %v3657_v16 = vld [vmem:[%s6793_s1 + $0x580] sm:$0xf]  ;;  %v3786_v23 = vor.u32 %v4423_v15, %v3785_v14  ;;  %v4419_v31 = vld [vmem:[%s6793_s1 + $0x66c] sm:$0xf0] }
  0x2e   :  { %v3529_v19 = vld [vmem:[%s6793_s1 + $0x480] sm:$0xf]  ;;  %1590 = vmatpush.bf16.msrb.mxu2 %v3802_v8  ;;  %v3658_v27 = vor.u32 %v4391_v17, %v3657_v16  ;;  %v4387_v34 = vld [vmem:[%s6793_s1 + $0x56c] sm:$0xf0]  ;;  %v2990_v8 = vor.u32 %v4221_v63, %v2987_v1  ;;  %v4329_v1 = vld [vmem:[%s6793_s1 + $0x3a4] sm:$0xf] }
  0x2f   :  { %1571 = vmatpush.bf16.msrb.mxu1 %v3674_v12  ;;  %v3769_v30 = vld [vmem:[%s6793_s1 + $0x660] sm:$0xf]  ;;  %v3530_v35 = vor.u32 %v4359_v20, %v3529_v19  ;;  %1609 = vmatpush.bf16.msrb.mxu3 %v3038_v22  ;;  %v4355_v42 = vld [vmem:[%s6793_s1 + $0x46c] sm:$0xf0]  ;;  %v2971_v12 = vld [vmem:[%s6793_s1 + $0x30] sm:$0xf0] }
  0x30   :  { %v2933_v32 = vld [vmem:[%s6794_s0 + $0x40] sm:$0xf]  ;;  %1552 = vmatpush.bf16.msrb.mxu0 %v3546_v18  ;;  %v3770_v40 = vor.u32 %v4419_v31, %v3769_v30  ;;  %v4415_v49 = vld [vmem:[%s6793_s1 + $0x64c] sm:$0xf0]  ;;  %v4337_v18 = vld [vmem:[%s6793_s1 + $0x3e4] sm:$0xf]  ;;  %v2974_v24 = vor.u32 %v4217_v11, %v2971_v12 }
  0x31   :  { %v3641_v33 = vld [vmem:[%s6793_s1 + $0x560] sm:$0xf]  ;;  %v4995_v51 = vor.u32 %v4210_v36, %v2933_v32  ;;  %v4383_v55 = vld [vmem:[%s6793_s1 + $0x54c] sm:$0xf0]  ;;  %v3451_v19 = vld [vmem:[%s6793_s1 + $0x3f0] sm:$0xf0] }
  0x32   :  { %v2935_v38 = vld [vmem:[%s6794_s0 + $0x5c] sm:$0xf0]  ;;  %1591 = vmatpush.bf16.msrb.mxu2 %v3786_v23  ;;  %v3642_v45 = vor.u32 %v4387_v34, %v3641_v33  ;;  %v4351_v62 = vld [vmem:[%s6793_s1 + $0x44c] sm:$0xf0]  ;;  %v4305_v22 = vld [vmem:[%s6793_s1 + $0x2e4] sm:$0xf]  ;;  %v3454_v32 = vor.u32 %v4337_v18, %v3451_v19 }
  0x33   :  { %v3513_v41 = vld [vmem:[%s6793_s1 + $0x460] sm:$0xf]  ;;  %1572 = vmatpush.bf16.msrb.mxu1 %v3658_v27  ;;  %v5003_v56 = vor.u32 %v4207_v37, %v2935_v38  ;;  %1610 = vmatpush.bf16.msrb.mxu3 %v3022_v39  ;;  %v4411_v3 = vld [vmem:[%s6793_s1 + $0x62c] sm:$0xf0]  ;;  %v3323_v23 = vld [vmem:[%s6793_s1 + $0x2f0] sm:$0xf0] }
  0x34   :  { %v3753_v47 = vld [vmem:[%s6793_s1 + $0x640] sm:$0xf]  ;;  %1553 = vmatpush.bf16.msrb.mxu0 %v3530_v35  ;;  %v3514_v58 = vor.u32 %v4355_v42, %v3513_v41  ;;  %v4379_v5 = vld [vmem:[%s6793_s1 + $0x52c] sm:$0xf0]  ;;  %v4213_v27 = vld [vmem:[%s6793_s1 + $0x4] sm:$0xf]  ;;  %v3326_v36 = vor.u32 %v4305_v22, %v3323_v23 }
  0x35   :  { %v3625_v52 = vld [vmem:[%s6793_s1 + $0x540] sm:$0xf]  ;;  %v3754_v60 = vor.u32 %v4415_v49, %v3753_v47  ;;  %1487 = vmatmul.bf16.gmra.mxu0 %v4982_v44  ;;  %1506 = vmatmul.bf16.gmra.mxu1 %v4993_v50  ;;  %v4347_v10 = vld [vmem:[%s6793_s1 + $0x42c] sm:$0xf0]  ;;  %v4204_v31 = vld [vmem:[%s6794_s0 + $0x28] sm:$0xf0] }
  0x36   :  { %1592 = vmatpush.bf16.msrb.mxu2 %v3770_v40  ;;  %v3497_v61 = vld [vmem:[%s6793_s1 + $0x440] sm:$0xf]  ;;  %v3626_v0 = vor.u32 %v4383_v55, %v3625_v52  ;;  %1544 = vmatmul.bf16.gmra.mxu3 %v5003_v56  ;;  %v4407_v15 = vld [vmem:[%s6793_s1 + $0x60c] sm:$0xf0]  ;;  %v4273_v33 = vld [vmem:[%s6793_s1 + $0x1e4] sm:$0xf] }
  0x37   :  { %1573 = vmatpush.bf16.msrb.mxu1 %v3642_v45  ;;  %v3737_v2 = vld [vmem:[%s6793_s1 + $0x620] sm:$0xf]  ;;  %1525 = vmatmul.bf16.gmra.mxu2 %v4995_v51  ;;  %v3498_v6 = vor.u32 %v4351_v62, %v3497_v61  ;;  %v4375_v17 = vld [vmem:[%s6793_s1 + $0x50c] sm:$0xf0]  ;;  %v3195_v34 = vld [vmem:[%s6793_s1 + $0x1f0] sm:$0xf0]  ;;  %v2958_v45 = vor.u32 %v4213_v27, %v2955_v28 }
  0x38   :  { %v3609_v4 = vld [vmem:[%s6793_s1 + $0x520] sm:$0xf]  ;;  %1554 = vmatpush.bf16.msrb.mxu0 %v3514_v58  ;;  %1611 = vmatpush.bf16.msrb.mxu3 %v3006_v59  ;;  %v3738_v9 = vor.u32 %v4411_v3, %v3737_v2  ;;  %v4343_v26 = vld [vmem:[%s6793_s1 + $0x40c] sm:$0xf0]  ;;  %v4369_v35 = vld [vmem:[%s6793_s1 + $0x4e4] sm:$0xf]  ;;  %v3198_v47 = vor.u32 %v4273_v33, %v3195_v34  ;;  %v5145_v3 = vor.u32 %v4205_v46, %v2921_v43 }
  0x39   :  { %v3481_v7 = vld [vmem:[%s6793_s1 + $0x420] sm:$0xf]  ;;  %v3610_v13 = vor.u32 %v4379_v5, %v3609_v4  ;;  %v2913_v30 = vld [vmem:[%s6794_s0 + $0x10] sm:$0xf]  ;;  %v3579_v37 = vld [vmem:[%s6793_s1 + $0x4f0] sm:$0xf0] }
  0x3a   :  { %1593 = vmatpush.bf16.msrb.mxu2 %v3754_v60  ;;  %v3721_v14 = vld [vmem:[%s6793_s1 + $0x600] sm:$0xf]  ;;  %v3482_v20 = vor.u32 %v4347_v10, %v3481_v7  ;;  %v4333_v38 = vld [vmem:[%s6793_s1 + $0x3c4] sm:$0xf]  ;;  %v3435_v39 = vld [vmem:[%s6793_s1 + $0x3d0] sm:$0xf0]  ;;  %v3582_v55 = vor.u32 %v4369_v35, %v3579_v37  ;;  %v5132_v62 = vor.u32 %v4204_v31, %v2913_v30 }
  0x3b   :  { %1574 = vmatpush.bf16.msrb.mxu1 %v3626_v0  ;;  %v3593_v16 = vld [vmem:[%s6793_s1 + $0x500] sm:$0xf]  ;;  %v3722_v25 = vor.u32 %v4407_v15, %v3721_v14  ;;  %v4201_v41 = vld [vmem:[%s6794_s0 + $0x14] sm:$0xf]  ;;  %v2915_v42 = vld [vmem:[%s6794_s0 + $0x2c] sm:$0xf0]  ;;  %v3438_v58 = vor.u32 %v4333_v38, %v3435_v39 }
  0x3c   :  { %1555 = vmatpush.bf16.msrb.mxu0 %v3498_v6  ;;  %v3465_v21 = vld [vmem:[%s6793_s1 + $0x400] sm:$0xf]  ;;  %1612 = vmatpush.bf16.msrb.mxu3 %v2990_v8  ;;  %v3594_v29 = vor.u32 %v4375_v17, %v3593_v16  ;;  %v4269_v49 = vld [vmem:[%s6793_s1 + $0x1c4] sm:$0xf]  ;;  %v3179_v52 = vld [vmem:[%s6793_s1 + $0x1d0] sm:$0xf0]  ;;  %v5134_v63 = vor.u32 %v4201_v41, %v2915_v42 }
  0x3d   :  { %v3466_v40 = vor.u32 %v4343_v26, %v3465_v21  ;;  %v4301_v59 = vld [vmem:[%s6793_s1 + $0x2c4] sm:$0xf]  ;;  %v3307_v60 = vld [vmem:[%s6793_s1 + $0x2d0] sm:$0xf0]  ;;  %v3182_v4 = vor.u32 %v4269_v49, %v3179_v52  ;;  %v2941_v33 = vld [vmem:[%s6794_s0 + $0x48] sm:$0xf] }
  0x3e   :  { %1594 = vmatpush.bf16.msrb.mxu2 %v3738_v9  ;;  %v4365_v61 = vld [vmem:[%s6793_s1 + $0x4c4] sm:$0xf]  ;;  %v3563_v0 = vld [vmem:[%s6793_s1 + $0x4d0] sm:$0xf0]  ;;  %v3310_v5 = vor.u32 %v4301_v59, %v3307_v60  ;;  %v4208_v42 = vld [vmem:[%s6794_s0 + $0x4c] sm:$0xf] }
  0x3f   :  { %1575 = vmatpush.bf16.msrb.mxu1 %v3610_v13  ;;  %v3419_v2 = vld [vmem:[%s6793_s1 + $0x3b0] sm:$0xf0]  ;;  %v4265_v6 = vld [vmem:[%s6793_s1 + $0x1a4] sm:$0xf]  ;;  %v3566_v8 = vor.u32 %v4365_v61, %v3563_v0  ;;  %v2943_v43 = vld [vmem:[%s6794_s0 + $0x64] sm:$0xf0] }
  0x40   :  { %1556 = vmatpush.bf16.msrb.mxu0 %v3482_v20  ;;  %1613 = vmatpush.bf16.msrb.mxu3 %v2974_v24  ;;  %v3163_v7 = vld [vmem:[%s6793_s1 + $0x1b0] sm:$0xf0]  ;;  %v3422_v9 = vor.u32 %v4329_v1, %v3419_v2  ;;  %v4297_v10 = vld [vmem:[%s6793_s1 + $0x2a4] sm:$0xf]  ;;  %v4212_v46 = vld [vmem:[%s6794_s0 + $0x68] sm:$0xf0]  ;;  %v5258_v2 = vor.u32 %v4208_v42, %v2943_v43 }
  0x41   :  { %v3291_v11 = vld [vmem:[%s6793_s1 + $0x2b0] sm:$0xf0]  ;;  %v4361_v12 = vld [vmem:[%s6793_s1 + $0x4a4] sm:$0xf]  ;;  %v3166_v16 = vor.u32 %v4265_v6, %v3163_v7  ;;  %v4240_v42 = vld [vmem:[%s6793_s1 + $0xd4] sm:$0xf0] }
  0x42   :  { %1595 = vmatpush.bf16.msrb.mxu2 %v3722_v25  ;;  %v3547_v13 = vld [vmem:[%s6793_s1 + $0x4b0] sm:$0xf0]  ;;  %v4325_v14 = vld [vmem:[%s6793_s1 + $0x384] sm:$0xf]  ;;  %v3294_v17 = vor.u32 %v4297_v10, %v3291_v11 }
  0x43   :  { %1576 = vmatpush.bf16.msrb.mxu1 %v3594_v29  ;;  %v3403_v15 = vld [vmem:[%s6793_s1 + $0x390] sm:$0xf0]  ;;  %v4261_v18 = vld [vmem:[%s6793_s1 + $0x184] sm:$0xf]  ;;  %v3550_v20 = vor.u32 %v4361_v12, %v3547_v13 }
  0x44   :  { %1557 = vmatpush.bf16.msrb.mxu0 %v3466_v40  ;;  %1614 = vmatpush.bf16.msrb.mxu3 %v2958_v45  ;;  %v3147_v19 = vld [vmem:[%s6793_s1 + $0x190] sm:$0xf0]  ;;  %v3406_v21 = vor.u32 %v4325_v14, %v3403_v15  ;;  %v4293_v22 = vld [vmem:[%s6793_s1 + $0x284] sm:$0xf]  ;;  %v2949_v45 = vld [vmem:[%s6794_s0 + $0x50] sm:$0xf] }
  0x45   :  { %v3275_v23 = vld [vmem:[%s6793_s1 + $0x290] sm:$0xf0]  ;;  %v4357_v24 = vld [vmem:[%s6793_s1 + $0x484] sm:$0xf]  ;;  %v3150_v28 = vor.u32 %v4261_v18, %v3147_v19  ;;  %v5269_v7 = vor.u32 %v4212_v46, %v2949_v45 }
  0x46   :  { %1664 = vmatpush.bf16.msra.mxu2 %v3454_v32  ;;  %1577 = vmatmul.bf16.vlgmr.msrb.gmra.mxu1 %v5134_v63  ;;  %v3531_v25 = vld [vmem:[%s6793_s1 + $0x490] sm:$0xf0]  ;;  %v4321_v26 = vld [vmem:[%s6793_s1 + $0x364] sm:$0xf]  ;;  %v3278_v29 = vor.u32 %v4293_v22, %v3275_v23 }
  0x47   :  { %1645 = vmatpush.bf16.msra.mxu1 %v3326_v36  ;;  %1558 = vmatmul.bf16.vlgmr.msrb.gmra.mxu0 %v5132_v62  ;;  %v3387_v27 = vld [vmem:[%s6793_s1 + $0x370] sm:$0xf0]  ;;  %v4257_v30 = vld [vmem:[%s6793_s1 + $0x164] sm:$0xf]  ;;  %v3534_v32 = vor.u32 %v4357_v24, %v3531_v25 }
  0x48   :  { %1626 = vmatpush.bf16.msra.mxu0 %v3198_v47  ;;  %1683 = vmatpush.bf16.msra.mxu3 %v3582_v55  ;;  %v3131_v31 = vld [vmem:[%s6793_s1 + $0x170] sm:$0xf0]  ;;  %v4211_v34 = vld [vmem:[%s6794_s0 + $0x60] sm:$0xf0]  ;;  %v3390_v35 = vor.u32 %v4321_v26, %v3387_v27 }
  0x49   :  { %1596 = vmatmul.bf16.vlgmr.msrb.gmra.mxu2 %v5145_v3  ;;  %1615 = vmatmul.bf16.vlgmr.msrb.gmra.mxu3 %v4850_v48  ;;  %v4289_v36 = vld [vmem:[%s6793_s1 + $0x264] sm:$0xf]  ;;  %v3259_v37 = vld [vmem:[%s6793_s1 + $0x270] sm:$0xf0]  ;;  %v3134_v47 = vor.u32 %v4257_v30, %v3131_v31  ;;  %v5256_v1 = vor.u32 %v4211_v34, %v2941_v33 }
  0x4a   :  { %1665 = vmatpush.bf16.msra.mxu2 %v3438_v58  ;;  %v4353_v38 = vld [vmem:[%s6793_s1 + $0x464] sm:$0xf]  ;;  %v3515_v39 = vld [vmem:[%s6793_s1 + $0x470] sm:$0xf0]  ;;  %v3262_v49 = vor.u32 %v4289_v36, %v3259_v37  ;;  %v3201_v37 = vld [vmem:[%s6793_s1 + $0x1e8] sm:$0xf] }
  0x4b   :  { %1646 = vmatpush.bf16.msra.mxu1 %v3310_v5  ;;  %v4317_v40 = vld [vmem:[%s6793_s1 + $0x344] sm:$0xf]  ;;  %v3371_v41 = vld [vmem:[%s6793_s1 + $0x350] sm:$0xf0]  ;;  %v3518_v58 = vor.u32 %v4353_v38, %v3515_v39  ;;  %v4276_v38 = vld [vmem:[%s6793_s1 + $0x1f4] sm:$0xf0] }
  0x4c   :  { %1627 = vmatpush.bf16.msra.mxu0 %v3182_v4  ;;  %1684 = vmatpush.bf16.msra.mxu3 %v3566_v8  ;;  %v4253_v52 = vld [vmem:[%s6793_s1 + $0x144] sm:$0xf]  ;;  %v3115_v55 = vld [vmem:[%s6793_s1 + $0x150] sm:$0xf0]  ;;  %v3374_v59 = vor.u32 %v4317_v40, %v3371_v41  ;;  %v3057_v41 = vld [vmem:[%s6793_s1 + $0xc8] sm:$0xf] }
  0x4d   :  { %v4285_v60 = vld [vmem:[%s6793_s1 + $0x244] sm:$0xf]  ;;  %v3243_v61 = vld [vmem:[%s6793_s1 + $0x250] sm:$0xf0]  ;;  %v3118_v8 = vor.u32 %v4253_v52, %v3115_v55  ;;  %v3058_v55 = vor.u32 %v4240_v42, %v3057_v41  ;;  %v2993_v41 = vld [vmem:[%s6793_s1 + $0x48] sm:$0xf] }
  0x4e   :  { %1666 = vmatpush.bf16.msra.mxu2 %v3422_v9  ;;  %v4349_v0 = vld [vmem:[%s6793_s1 + $0x444] sm:$0xf]  ;;  %v3499_v4 = vld [vmem:[%s6793_s1 + $0x450] sm:$0xf0]  ;;  %v3246_v9 = vor.u32 %v4285_v60, %v3243_v61  ;;  %v3185_v61 = vld [vmem:[%s6793_s1 + $0x1c8] sm:$0xf] }
  0x4f   :  { %1647 = vmatpush.bf16.msra.mxu1 %v3294_v17  ;;  %v4313_v5 = vld [vmem:[%s6793_s1 + $0x324] sm:$0xf]  ;;  %v3355_v6 = vld [vmem:[%s6793_s1 + $0x330] sm:$0xf0]  ;;  %v3502_v12 = vor.u32 %v4349_v0, %v3499_v4  ;;  %v4272_v0 = vld [vmem:[%s6793_s1 + $0x1d4] sm:$0xf0] }
  0x50   :  { %1628 = vmatpush.bf16.msra.mxu0 %v3166_v16  ;;  %1685 = vmatpush.bf16.msra.mxu3 %v3550_v20  ;;  %v4249_v10 = vld [vmem:[%s6793_s1 + $0x124] sm:$0xf]  ;;  %v3099_v11 = vld [vmem:[%s6793_s1 + $0x130] sm:$0xf0]  ;;  %v3358_v13 = vor.u32 %v4313_v5, %v3355_v6  ;;  %v3073_v20 = vld [vmem:[%s6793_s1 + $0xe8] sm:$0xf] }
  0x51   :  { %v4281_v14 = vld [vmem:[%s6793_s1 + $0x224] sm:$0xf]  ;;  %v3227_v15 = vld [vmem:[%s6793_s1 + $0x230] sm:$0xf0]  ;;  %v3102_v22 = vor.u32 %v4249_v10, %v3099_v11  ;;  %v3041_v4 = vld [vmem:[%s6793_s1 + $0xa8] sm:$0xf]  ;;  %v3186_v10 = vor.u32 %v4272_v0, %v3185_v61 }
  0x52   :  { %1667 = vmatpush.bf16.msra.mxu2 %v3406_v21  ;;  %v4345_v16 = vld [vmem:[%s6793_s1 + $0x424] sm:$0xf]  ;;  %v3483_v17 = vld [vmem:[%s6793_s1 + $0x430] sm:$0xf0]  ;;  %v4244_v21 = vld [vmem:[%s6793_s1 + $0xf4] sm:$0xf0]  ;;  %v3230_v23 = vor.u32 %v4281_v14, %v3227_v15 }
  0x53   :  { %1648 = vmatpush.bf16.msra.mxu1 %v3278_v29  ;;  %v4309_v18 = vld [vmem:[%s6793_s1 + $0x304] sm:$0xf]  ;;  %v3339_v19 = vld [vmem:[%s6793_s1 + $0x310] sm:$0xf0]  ;;  %v3486_v27 = vor.u32 %v4345_v16, %v3483_v17  ;;  %v4236_v5 = vld [vmem:[%s6793_s1 + $0xb4] sm:$0xf0] }
  0x54   :  { %1629 = vmatpush.bf16.msra.mxu0 %v3150_v28  ;;  %1686 = vmatpush.bf16.msra.mxu3 %v3534_v32  ;;  %v4245_v24 = vld [vmem:[%s6793_s1 + $0x104] sm:$0xf]  ;;  %v3083_v25 = vld [vmem:[%s6793_s1 + $0x110] sm:$0xf0]  ;;  %v3342_v28 = vor.u32 %v4309_v18, %v3339_v19  ;;  %v3074_v32 = vor.u32 %v4244_v21, %v3073_v20  ;;  %v3169_v15 = vld [vmem:[%s6793_s1 + $0x1a8] sm:$0xf] }
  0x55   :  { %v4277_v26 = vld [vmem:[%s6793_s1 + $0x204] sm:$0xf]  ;;  %v3211_v29 = vld [vmem:[%s6793_s1 + $0x210] sm:$0xf0]  ;;  %v3086_v39 = vor.u32 %v4245_v24, %v3083_v25  ;;  %v4268_v16 = vld [vmem:[%s6793_s1 + $0x1b4] sm:$0xf0] }
  0x56   :  { %1668 = vmatpush.bf16.msra.mxu2 %v3390_v35  ;;  %1582 = vmatmul.bf16.gmra.mxu1 %v5258_v2  ;;  %v4341_v30 = vld [vmem:[%s6793_s1 + $0x404] sm:$0xf]  ;;  %v3467_v31 = vld [vmem:[%s6793_s1 + $0x410] sm:$0xf0]  ;;  %v3214_v40 = vor.u32 %v4277_v26, %v3211_v29  ;;  %v3025_v17 = vld [vmem:[%s6793_s1 + $0x88] sm:$0xf] }
  0x57   :  { %1649 = vmatpush.bf16.msra.mxu1 %v3262_v49  ;;  %1563 = vmatmul.bf16.gmra.mxu0 %v5256_v1  ;;  %v4401_v33 = vld [vmem:[%s6793_s1 + $0x5e4] sm:$0xf]  ;;  %v3707_v34 = vld [vmem:[%s6793_s1 + $0x5f0] sm:$0xf0]  ;;  %v3470_v43 = vor.u32 %v4341_v30, %v3467_v31  ;;  %v4232_v18 = vld [vmem:[%s6793_s1 + $0x94] sm:$0xf0] }
  0x58   :  { %1630 = vmatpush.bf16.msra.mxu0 %v3134_v47  ;;  %1687 = vmatpush.bf16.msra.mxu3 %v3518_v58  ;;  %v4433_v35 = vld [vmem:[%s6793_s1 + $0x6e4] sm:$0xf]  ;;  %v3835_v36 = vld [vmem:[%s6793_s1 + $0x6f0] sm:$0xf0]  ;;  %v3710_v45 = vor.u32 %v4401_v33, %v3707_v34  ;;  %v3202_v47 = vor.u32 %v4276_v38, %v3201_v37  ;;  %v3026_v25 = vor.u32 %v4232_v18, %v3025_v17  ;;  %v3009_v29 = vld [vmem:[%s6793_s1 + $0x68] sm:$0xf] }
  0x59   :  { %1601 = vmatmul.bf16.gmra.mxu2 %v5269_v7  ;;  %1620 = vmatmul.bf16.gmra.mxu3 %v4982_v44  ;;  %v3838_v46 = vor.u32 %v4433_v35, %v3835_v36  ;;  %v4397_v49 = vld [vmem:[%s6793_s1 + $0x5c4] sm:$0xf]  ;;  %v3691_v52 = vld [vmem:[%s6793_s1 + $0x5d0] sm:$0xf0]  ;;  %v4228_v30 = vld [vmem:[%s6793_s1 + $0x74] sm:$0xf0] }
  0x5a   :  { %1669 = vmatpush.bf16.msra.mxu2 %v3374_v59  ;;  %v4429_v58 = vld [vmem:[%s6793_s1 + $0x6c4] sm:$0xf]  ;;  %v3819_v59 = vld [vmem:[%s6793_s1 + $0x6d0] sm:$0xf0]  ;;  %v3694_v60 = vor.u32 %v4397_v49, %v3691_v52  ;;  %v3010_v37 = vor.u32 %v4228_v30, %v3009_v29  ;;  %v4224_v42 = vld [vmem:[%s6793_s1 + $0x54] sm:$0xf0] }
  0x5b   :  { %1650 = vmatpush.bf16.msra.mxu1 %v3246_v9  ;;  %v4393_v6 = vld [vmem:[%s6793_s1 + $0x5a4] sm:$0xf]  ;;  %v3822_v9 = vor.u32 %v4429_v58, %v3819_v59  ;;  %v3659_v20 = vld [vmem:[%s6793_s1 + $0x590] sm:$0xf0]  ;;  %v3121_v59 = vld [vmem:[%s6793_s1 + $0x148] sm:$0xf] }
  0x5c   :  { %1631 = vmatpush.bf16.msra.mxu0 %v3118_v8  ;;  %1688 = vmatpush.bf16.msra.mxu3 %v3502_v12  ;;  %v3675_v8 = vld [vmem:[%s6793_s1 + $0x5b0] sm:$0xf0]  ;;  %v4425_v11 = vld [vmem:[%s6793_s1 + $0x6a4] sm:$0xf]  ;;  %v2977_v61 = vld [vmem:[%s6793_s1 + $0x28] sm:$0xf] }
  0x5d   :  { %v3803_v12 = vld [vmem:[%s6793_s1 + $0x6b0] sm:$0xf0]  ;;  %v3678_v14 = vor.u32 %v4393_v6, %v3675_v8  ;;  %v4389_v19 = vld [vmem:[%s6793_s1 + $0x584] sm:$0xf]  ;;  %v4220_v0 = vld [vmem:[%s6793_s1 + $0x34] sm:$0xf0] }
  0x5e   :  { %1670 = vmatpush.bf16.msra.mxu2 %v3358_v13  ;;  %v3042_v13 = vor.u32 %v4236_v5, %v3041_v4  ;;  %v3806_v21 = vor.u32 %v4425_v11, %v3803_v12  ;;  %v3787_v24 = vld [vmem:[%s6793_s1 + $0x690] sm:$0xf0]  ;;  %v3662_v26 = vor.u32 %v4389_v19, %v3659_v20  ;;  %v4385_v31 = vld [vmem:[%s6793_s1 + $0x564] sm:$0xf]  ;;  %v3105_v11 = vld [vmem:[%s6793_s1 + $0x128] sm:$0xf]  ;;  %v2978_v12 = vor.u32 %v4220_v0, %v2977_v61 }
  0x5f   :  { %1651 = vmatpush.bf16.msra.mxu1 %v3230_v23  ;;  %v4421_v23 = vld [vmem:[%s6793_s1 + $0x684] sm:$0xf]  ;;  %v3771_v36 = vld [vmem:[%s6793_s1 + $0x670] sm:$0xf0]  ;;  %v3585_v19 = vld [vmem:[%s6793_s1 + $0x4e8] sm:$0xf] }
  0x60   :  { %1632 = vmatpush.bf16.msra.mxu0 %v3102_v22  ;;  %1689 = vmatpush.bf16.msra.mxu3 %v3486_v27  ;;  %v3170_v22 = vor.u32 %v4268_v16, %v3169_v15  ;;  %v3153_v27 = vld [vmem:[%s6793_s1 + $0x188] sm:$0xf]  ;;  %v3790_v33 = vor.u32 %v4421_v23, %v3787_v24  ;;  %v4417_v35 = vld [vmem:[%s6793_s1 + $0x664] sm:$0xf]  ;;  %v3755_v52 = vld [vmem:[%s6793_s1 + $0x650] sm:$0xf0] }
  0x61   :  { %v4413_v49 = vld [vmem:[%s6793_s1 + $0x644] sm:$0xf]  ;;  %v3611_v5 = vld [vmem:[%s6793_s1 + $0x530] sm:$0xf0]  ;;  %v2961_v15 = vld [vmem:[%s6793_s1 + $0x8] sm:$0xf] }
  0x62   :  { %1671 = vmatpush.bf16.msra.mxu2 %v3342_v28  ;;  %v4264_v28 = vld [vmem:[%s6793_s1 + $0x194] sm:$0xf0]  ;;  %v4377_v4 = vld [vmem:[%s6793_s1 + $0x524] sm:$0xf]  ;;  %v3758_v6 = vor.u32 %v4413_v49, %v3755_v52  ;;  %v3595_v18 = vld [vmem:[%s6793_s1 + $0x510] sm:$0xf0] }
  0x63   :  { %1652 = vmatpush.bf16.msra.mxu1 %v3214_v40  ;;  %v3154_v34 = vor.u32 %v4264_v28, %v3153_v27  ;;  %v4260_v40 = vld [vmem:[%s6793_s1 + $0x174] sm:$0xf0]  ;;  %v4373_v17 = vld [vmem:[%s6793_s1 + $0x504] sm:$0xf]  ;;  %v3089_v27 = vld [vmem:[%s6793_s1 + $0x108] sm:$0xf] }
  0x64   :  { %1633 = vmatpush.bf16.msra.mxu0 %v3086_v39  ;;  %1690 = vmatpush.bf16.msra.mxu3 %v3470_v43  ;;  %v3137_v39 = vld [vmem:[%s6793_s1 + $0x168] sm:$0xf]  ;;  %v4381_v43 = vld [vmem:[%s6793_s1 + $0x544] sm:$0xf]  ;;  %v4216_v16 = vld [vmem:[%s6793_s1 + $0x14] sm:$0xf0]  ;;  %v3598_v29 = vor.u32 %v4373_v17, %v3595_v18 }
  0x65   :  { %v4372_v20 = vld [vmem:[%s6793_s1 + $0x4f4] sm:$0xf0]  ;;  %v2962_v28 = vor.u32 %v4216_v16, %v2961_v15  ;;  %v3281_v17 = vld [vmem:[%s6793_s1 + $0x288] sm:$0xf] }
  0x66   :  { %1740 = vmatpush.bf16.msrb.mxu2 %v3074_v32  ;;  %1653 = vmatmul.bf16.vlgmr.msra.gmra.mxu1 %v4863_v54  ;;  %v3643_v32 = vld [vmem:[%s6793_s1 + $0x570] sm:$0xf0]  ;;  %v4248_v30 = vld [vmem:[%s6793_s1 + $0x114] sm:$0xf0] }
  0x67   :  { %1721 = vmatpush.bf16.msrb.mxu1 %v3838_v46  ;;  %1634 = vmatmul.bf16.vlgmr.msra.gmra.mxu0 %v4861_v53  ;;  %v3646_v38 = vor.u32 %v4385_v31, %v3643_v32  ;;  %v3774_v46 = vor.u32 %v4417_v35, %v3771_v36  ;;  %v3457_v31 = vld [vmem:[%s6793_s1 + $0x3e8] sm:$0xf]  ;;  %v4340_v32 = vld [vmem:[%s6793_s1 + $0x3f4] sm:$0xf0] }
  0x68   :  { %1702 = vmatpush.bf16.msrb.mxu0 %v3710_v45  ;;  %1759 = vmatpush.bf16.msrb.mxu3 %v3202_v47  ;;  %v3627_v45 = vld [vmem:[%s6793_s1 + $0x550] sm:$0xf0]  ;;  %v3138_v47 = vor.u32 %v4260_v40, %v3137_v39  ;;  %v3713_v35 = vld [vmem:[%s6793_s1 + $0x5e8] sm:$0xf]  ;;  %v4404_v36 = vld [vmem:[%s6793_s1 + $0x5f4] sm:$0xf0] }
  0x69   :  { %1672 = vmatmul.bf16.vlgmr.msra.gmra.mxu2 %v4871_v57  ;;  %1691 = vmatmul.bf16.vlgmr.msra.gmra.mxu3 %v5132_v62  ;;  %v3630_v58 = vor.u32 %v4381_v43, %v3627_v45  ;;  %v3313_v39 = vld [vmem:[%s6793_s1 + $0x2c8] sm:$0xf]  ;;  %v4304_v40 = vld [vmem:[%s6793_s1 + $0x2d4] sm:$0xf0]  ;;  %v3458_v43 = vor.u32 %v4340_v32, %v3457_v31  ;;  %v3714_v45 = vor.u32 %v4404_v36, %v3713_v35 }
  0x6a   :  { %1741 = vmatpush.bf16.msrb.mxu2 %v3058_v55  ;;  %v2994_v55 = vor.u32 %v4224_v42, %v2993_v41  ;;  %v3090_v42 = vor.u32 %v4248_v30, %v3089_v27  ;;  %v3314_v49 = vor.u32 %v4304_v40, %v3313_v39  ;;  %v4336_v52 = vld [vmem:[%s6793_s1 + $0x3d4] sm:$0xf0]  ;;  %v3393_v31 = vld [vmem:[%s6793_s1 + $0x368] sm:$0xf] }
  0x6b   :  { %1722 = vmatpush.bf16.msrb.mxu1 %v3822_v9  ;;  %v4409_v9 = vld [vmem:[%s6793_s1 + $0x624] sm:$0xf]  ;;  %v4296_v18 = vld [vmem:[%s6793_s1 + $0x294] sm:$0xf0] }
  0x6c   :  { %1703 = vmatpush.bf16.msrb.mxu0 %v3694_v60  ;;  %1760 = vmatpush.bf16.msrb.mxu3 %v3186_v10  ;;  %v4256_v60 = vld [vmem:[%s6793_s1 + $0x154] sm:$0xf0]  ;;  %v3739_v10 = vld [vmem:[%s6793_s1 + $0x630] sm:$0xf0] }
  0x6d   :  { %v3122_v8 = vor.u32 %v4256_v60, %v3121_v59  ;;  %v3742_v23 = vor.u32 %v4409_v9, %v3739_v10  ;;  %v3553_v59 = vld [vmem:[%s6793_s1 + $0x4a8] sm:$0xf]  ;;  %v4364_v60 = vld [vmem:[%s6793_s1 + $0x4b4] sm:$0xf0] }
  0x6e   :  { %1742 = vmatpush.bf16.msrb.mxu2 %v3042_v13  ;;  %v3614_v13 = vor.u32 %v4377_v4, %v3611_v5  ;;  %v3297_v4 = vld [vmem:[%s6793_s1 + $0x2a8] sm:$0xf]  ;;  %v4300_v5 = vld [vmem:[%s6793_s1 + $0x2b4] sm:$0xf0] }
  0x6f   :  { %1723 = vmatpush.bf16.msrb.mxu1 %v3806_v21  ;;  %v3329_v21 = vld [vmem:[%s6793_s1 + $0x2e8] sm:$0xf]  ;;  %v4396_v10 = vld [vmem:[%s6793_s1 + $0x5b4] sm:$0xf0] }
  0x70   :  { %1704 = vmatpush.bf16.msrb.mxu0 %v3678_v14  ;;  %1761 = vmatpush.bf16.msrb.mxu3 %v3170_v22  ;;  %v4252_v14 = vld [vmem:[%s6793_s1 + $0x134] sm:$0xf0]  ;;  %v3681_v9 = vld [vmem:[%s6793_s1 + $0x5a8] sm:$0xf] }
  0x71   :  { %v4308_v22 = vld [vmem:[%s6793_s1 + $0x2f4] sm:$0xf0]  ;;  %v3106_v24 = vor.u32 %v4252_v14, %v3105_v11  ;;  %v3554_v11 = vor.u32 %v4364_v60, %v3553_v59  ;;  %v3682_v16 = vor.u32 %v4396_v10, %v3681_v9  ;;  %v3473_v9 = vld [vmem:[%s6793_s1 + $0x408] sm:$0xf] }
  0x72   :  { %1743 = vmatpush.bf16.msrb.mxu2 %v3026_v25  ;;  %v4405_v25 = vld [vmem:[%s6793_s1 + $0x604] sm:$0xf]  ;;  %v4360_v14 = vld [vmem:[%s6793_s1 + $0x494] sm:$0xf0] }
  0x73   :  { %1724 = vmatpush.bf16.msrb.mxu1 %v3790_v33  ;;  %v3586_v33 = vor.u32 %v4372_v20, %v3585_v19  ;;  %v3409_v19 = vld [vmem:[%s6793_s1 + $0x388] sm:$0xf]  ;;  %v4328_v20 = vld [vmem:[%s6793_s1 + $0x394] sm:$0xf0] }
  0x74   :  { %1705 = vmatpush.bf16.msrb.mxu0 %v3662_v26  ;;  %1762 = vmatpush.bf16.msrb.mxu3 %v3154_v34  ;;  %v3723_v26 = vld [vmem:[%s6793_s1 + $0x610] sm:$0xf0]  ;;  %v3330_v34 = vor.u32 %v4308_v22, %v3329_v21  ;;  %v3665_v21 = vld [vmem:[%s6793_s1 + $0x588] sm:$0xf]  ;;  %v4392_v22 = vld [vmem:[%s6793_s1 + $0x594] sm:$0xf0]  ;;  %v3410_v27 = vor.u32 %v4328_v20, %v3409_v19 }
  0x75   :  { %v3726_v41 = vor.u32 %v4405_v25, %v3723_v26  ;;  %v3521_v25 = vld [vmem:[%s6793_s1 + $0x468] sm:$0xf]  ;;  %v4356_v26 = vld [vmem:[%s6793_s1 + $0x474] sm:$0xf0] }
  0x76   :  { %1744 = vmatpush.bf16.msrb.mxu2 %v3010_v37  ;;  %1658 = vmatmul.bf16.gmra.mxu1 %v4995_v51  ;;  %v3569_v37 = vld [vmem:[%s6793_s1 + $0x4c8] sm:$0xf]  ;;  %v4292_v30 = vld [vmem:[%s6793_s1 + $0x274] sm:$0xf0]  ;;  %v3522_v35 = vor.u32 %v4356_v26, %v3521_v25  ;;  %v4242_v25 = vld [vmem:[%s6793_s1 + $0xec] sm:$0xf] }
  0x77   :  { %1725 = vmatpush.bf16.msrb.mxu1 %v3774_v46  ;;  %1639 = vmatmul.bf16.gmra.mxu0 %v4993_v50  ;;  %v3441_v46 = vld [vmem:[%s6793_s1 + $0x3c8] sm:$0xf]  ;;  %v4324_v32 = vld [vmem:[%s6793_s1 + $0x374] sm:$0xf0] }
  0x78   :  { %1706 = vmatpush.bf16.msrb.mxu0 %v3646_v38  ;;  %1763 = vmatpush.bf16.msrb.mxu3 %v3138_v47  ;;  %v4368_v38 = vld [vmem:[%s6793_s1 + $0x4d4] sm:$0xf0]  ;;  %v3442_v61 = vor.u32 %v4336_v52, %v3441_v46  ;;  %v3394_v39 = vor.u32 %v4324_v32, %v3393_v31  ;;  %v3633_v46 = vld [vmem:[%s6793_s1 + $0x548] sm:$0xf] }
  0x79   :  { %1677 = vmatmul.bf16.gmra.mxu2 %v5003_v56  ;;  %1696 = vmatmul.bf16.gmra.mxu3 %v5256_v1  ;;  %v3570_v47 = vor.u32 %v4368_v38, %v3569_v37  ;;  %v3505_v37 = vld [vmem:[%s6793_s1 + $0x448] sm:$0xf]  ;;  %v4352_v38 = vld [vmem:[%s6793_s1 + $0x454] sm:$0xf0] }
  0x7a   :  { %1745 = vmatpush.bf16.msrb.mxu2 %v2994_v55  ;;  %v3697_v55 = vld [vmem:[%s6793_s1 + $0x5c8] sm:$0xf]  ;;  %v4376_v20 = vld [vmem:[%s6793_s1 + $0x514] sm:$0xf0] }
  0x7b   :  { %1726 = vmatpush.bf16.msrb.mxu1 %v3758_v6  ;;  %v3425_v6 = vld [vmem:[%s6793_s1 + $0x3a8] sm:$0xf] }
  0x7c   :  { %1707 = vmatpush.bf16.msrb.mxu0 %v3630_v58  ;;  %1764 = vmatpush.bf16.msrb.mxu3 %v3122_v8  ;;  %v4400_v58 = vld [vmem:[%s6793_s1 + $0x5d4] sm:$0xf0]  ;;  %v3601_v19 = vld [vmem:[%s6793_s1 + $0x508] sm:$0xf] }
  0x7d   :  { %v3698_v0 = vor.u32 %v4400_v58, %v3697_v55  ;;  %v4332_v8 = vld [vmem:[%s6793_s1 + $0x3b4] sm:$0xf0]  ;;  %v3489_v55 = vld [vmem:[%s6793_s1 + $0x428] sm:$0xf]  ;;  %v3602_v32 = vor.u32 %v4376_v20, %v3601_v19 }
  0x7e   :  { %1746 = vmatpush.bf16.msrb.mxu2 %v2978_v12  ;;  %v3298_v12 = vor.u32 %v4300_v5, %v3297_v4  ;;  %v3426_v15 = vor.u32 %v4332_v8, %v3425_v6  ;;  %v4348_v58 = vld [vmem:[%s6793_s1 + $0x434] sm:$0xf0]  ;;  %v3361_v4 = vld [vmem:[%s6793_s1 + $0x328] sm:$0xf] }
  0x7f   :  { %1727 = vmatpush.bf16.msrb.mxu1 %v3742_v23  ;;  %v4316_v5 = vld [vmem:[%s6793_s1 + $0x334] sm:$0xf0]  ;;  %v3617_v6 = vld [vmem:[%s6793_s1 + $0x528] sm:$0xf]  ;;  %v3490_v10 = vor.u32 %v4348_v58, %v3489_v55 }
  0x80   :  { %1708 = vmatpush.bf16.msrb.mxu0 %v3614_v13  ;;  %1765 = vmatpush.bf16.msrb.mxu3 %v3106_v24  ;;  %v3537_v13 = vld [vmem:[%s6793_s1 + $0x488] sm:$0xf]  ;;  %v3282_v24 = vor.u32 %v4296_v18, %v3281_v17  ;;  %v4380_v8 = vld [vmem:[%s6793_s1 + $0x534] sm:$0xf0] }
  0x81   :  { %v3538_v23 = vor.u32 %v4360_v14, %v3537_v13  ;;  %v3217_v13 = vld [vmem:[%s6793_s1 + $0x208] sm:$0xf]  ;;  %v4280_v14 = vld [vmem:[%s6793_s1 + $0x214] sm:$0xf0] }
  0x82   :  { %1747 = vmatpush.bf16.msrb.mxu2 %v2962_v28  ;;  %v3666_v28 = vor.u32 %v4392_v22, %v3665_v21  ;;  %v3345_v17 = vld [vmem:[%s6793_s1 + $0x308] sm:$0xf]  ;;  %v4312_v18 = vld [vmem:[%s6793_s1 + $0x314] sm:$0xf0]  ;;  %v4274_v21 = vld [vmem:[%s6793_s1 + $0x1ec] sm:$0xf] }
  0x83   :  { %1728 = vmatpush.bf16.msrb.mxu1 %v3726_v41  ;;  %v3249_v41 = vld [vmem:[%s6793_s1 + $0x248] sm:$0xf]  ;;  %v3203_v22 = vld [vmem:[%s6793_s1 + $0x1f8] sm:$0xf0]  ;;  %v3346_v31 = vor.u32 %v4312_v18, %v3345_v17  ;;  %v4424_v20 = vld [vmem:[%s6793_s1 + $0x694] sm:$0xf0] }
  0x84   :  { %1709 = vmatpush.bf16.msrb.mxu0 %v3598_v29  ;;  %1766 = vmatpush.bf16.msrb.mxu3 %v3090_v42  ;;  %v3265_v29 = vld [vmem:[%s6793_s1 + $0x268] sm:$0xf]  ;;  %v4288_v42 = vld [vmem:[%s6793_s1 + $0x254] sm:$0xf0] }
  0x85   :  { %v3266_v36 = vor.u32 %v4292_v30, %v3265_v29  ;;  %v3250_v52 = vor.u32 %v4288_v42, %v3249_v41  ;;  %v4306_v29 = vld [vmem:[%s6793_s1 + $0x2ec] sm:$0xf]  ;;  %v3331_v30 = vld [vmem:[%s6793_s1 + $0x2f8] sm:$0xf0]  ;;  %v4432_v41 = vld [vmem:[%s6793_s1 + $0x6d4] sm:$0xf0] }
  0x86   :  { %1816 = vmatpush.bf16.msra.mxu2 %v3586_v33  ;;  %1729 = vmatmul.bf16.vlgmr.msrb.gmra.mxu1 %v5145_v3  ;;  %v3649_v33 = vld [vmem:[%s6793_s1 + $0x568] sm:$0xf]  ;;  %v4238_v42 = vld [vmem:[%s6793_s1 + $0xcc] sm:$0xf] }
  0x87   :  { %1797 = vmatpush.bf16.msra.mxu1 %v3458_v43  ;;  %1710 = vmatmul.bf16.vlgmr.msrb.gmra.mxu0 %v5134_v63  ;;  %v3377_v43 = vld [vmem:[%s6793_s1 + $0x348] sm:$0xf] }
  0x88   :  { %1778 = vmatpush.bf16.msra.mxu0 %v3330_v34  ;;  %1835 = vmatpush.bf16.msra.mxu3 %v3714_v45  ;;  %v4388_v34 = vld [vmem:[%s6793_s1 + $0x574] sm:$0xf0]  ;;  %v3793_v19 = vld [vmem:[%s6793_s1 + $0x688] sm:$0xf] }
  0x89   :  { %1748 = vmatmul.bf16.vlgmr.msrb.gmra.mxu2 %v4850_v48  ;;  %1767 = vmatmul.bf16.vlgmr.msrb.gmra.mxu3 %v4861_v53  ;;  %v3650_v40 = vor.u32 %v4388_v34, %v3649_v33  ;;  %v4320_v45 = vld [vmem:[%s6793_s1 + $0x354] sm:$0xf0]  ;;  %v5744_v33 = vld [vmem:[%s6795_s2] sm:$0xf]  ;;  %v3206_v34 = vor.u32 %v4274_v21, %v3203_v22  ;;  %v4230_v21 = vld [vmem:[%s6793_s1 + $0x8c] sm:$0xf] }
  0x8a   :  { %1817 = vmatpush.bf16.msra.mxu2 %v3570_v47  ;;  %v4384_v47 = vld [vmem:[%s6793_s1 + $0x554] sm:$0xf0]  ;;  %v3378_v59 = vor.u32 %v4320_v45, %v3377_v43  ;;  %v3059_v43 = vld [vmem:[%s6793_s1 + $0xd8] sm:$0xf0]  ;;  %v4302_v45 = vld [vmem:[%s6793_s1 + $0x2cc] sm:$0xf] }
  0x8b   :  { %1798 = vmatpush.bf16.msra.mxu1 %v3442_v61  ;;  %v3634_v60 = vor.u32 %v4384_v47, %v3633_v46  ;;  %v3233_v61 = vld [vmem:[%s6793_s1 + $0x228] sm:$0xf]  ;;  %v3315_v46 = vld [vmem:[%s6793_s1 + $0x2d8] sm:$0xf0]  ;;  %v3062_v55 = vor.u32 %v4238_v42, %v3059_v43 }
  0x8c   :  { %1779 = vmatpush.bf16.msra.mxu0 %v3314_v49  ;;  %1836 = vmatpush.bf16.msra.mxu3 %v3698_v0  ;;  %v3506_v49 = vor.u32 %v4352_v38, %v3505_v37  ;;  %v4284_v0 = vld [vmem:[%s6793_s1 + $0x234] sm:$0xf0]  ;;  %v3187_v37 = vld [vmem:[%s6793_s1 + $0x1d8] sm:$0xf0]  ;;  %v3318_v58 = vor.u32 %v4302_v45, %v3315_v46 }
  0x8d   :  { %v3027_v22 = vld [vmem:[%s6793_s1 + $0x98] sm:$0xf0] }
  0x8e   :  { %1818 = vmatpush.bf16.msra.mxu2 %v3554_v11  ;;  %v3234_v11 = vor.u32 %v4284_v0, %v3233_v61  ;;  %v3809_v61 = vld [vmem:[%s6793_s1 + $0x6a8] sm:$0xf]  ;;  %v4428_v0 = vld [vmem:[%s6793_s1 + $0x6b4] sm:$0xf0] }
  0x8f   :  { %1799 = vmatpush.bf16.msra.mxu1 %v3426_v15  ;;  %v3362_v15 = vor.u32 %v4316_v5, %v3361_v4  ;;  %v4234_v4 = vld [vmem:[%s6793_s1 + $0xac] sm:$0xf] }
  0x90   :  { %1780 = vmatpush.bf16.msra.mxu0 %v3298_v12  ;;  %1837 = vmatpush.bf16.msra.mxu3 %v3682_v16  ;;  %v4344_v12 = vld [vmem:[%s6793_s1 + $0x414] sm:$0xf0]  ;;  %v3618_v16 = vor.u32 %v4380_v8, %v3617_v6  ;;  %v3043_v6 = vld [vmem:[%s6793_s1 + $0xb8] sm:$0xf0]  ;;  %v4298_v8 = vld [vmem:[%s6793_s1 + $0x2ac] sm:$0xf] }
  0x91   :  { %v3474_v26 = vor.u32 %v4344_v12, %v3473_v9  ;;  %v3299_v9 = vld [vmem:[%s6793_s1 + $0x2b8] sm:$0xf0]  ;;  %v3046_v17 = vor.u32 %v4234_v4, %v3043_v6  ;;  %v4222_v4 = vld [vmem:[%s6793_s1 + $0x4c] sm:$0xf] }
  0x92   :  { %1819 = vmatpush.bf16.msra.mxu2 %v3538_v23  ;;  %v3841_v23 = vld [vmem:[%s6793_s1 + $0x6e8] sm:$0xf]  ;;  %v3302_v18 = vor.u32 %v4298_v8, %v3299_v9  ;;  %v4286_v6 = vld [vmem:[%s6793_s1 + $0x24c] sm:$0xf]  ;;  %v3251_v8 = vld [vmem:[%s6793_s1 + $0x258] sm:$0xf0] }
  0x93   :  { %1800 = vmatpush.bf16.msra.mxu1 %v3410_v27  ;;  %v3218_v27 = vor.u32 %v4280_v14, %v3217_v13  ;;  %v3810_v13 = vor.u32 %v4428_v0, %v3809_v61  ;;  %v4262_v14 = vld [vmem:[%s6793_s1 + $0x18c] sm:$0xf]  ;;  %v3761_v61 = vld [vmem:[%s6793_s1 + $0x648] sm:$0xf]  ;;  %v4416_v0 = vld [vmem:[%s6793_s1 + $0x654] sm:$0xf0] }
  0x94   :  { %1781 = vmatpush.bf16.msra.mxu0 %v3282_v24  ;;  %1838 = vmatpush.bf16.msra.mxu3 %v3666_v28  ;;  %v4436_v24 = vld [vmem:[%s6793_s1 + $0x6f4] sm:$0xf0]  ;;  %v3075_v28 = vld [vmem:[%s6793_s1 + $0xf8] sm:$0xf0] }
  0x95   :  { %v3078_v38 = vor.u32 %v4242_v25, %v3075_v28  ;;  %v3139_v28 = vld [vmem:[%s6793_s1 + $0x178] sm:$0xf0] }
  0x96   :  { %1820 = vmatpush.bf16.msra.mxu2 %v3522_v35  ;;  %1734 = vmatmul.bf16.gmra.mxu1 %v5269_v7  ;;  %v3842_v35 = vor.u32 %v4436_v24, %v3841_v23  ;;  %v4294_v23 = vld [vmem:[%s6793_s1 + $0x28c] sm:$0xf]  ;;  %v3283_v24 = vld [vmem:[%s6793_s1 + $0x298] sm:$0xf0] }
  0x97   :  { %1801 = vmatpush.bf16.msra.mxu1 %v3394_v39  ;;  %1715 = vmatmul.bf16.gmra.mxu0 %v5258_v2  ;;  %v3334_v39 = vor.u32 %v4306_v29, %v3331_v30  ;;  %v3030_v30 = vor.u32 %v4230_v21, %v3027_v22  ;;  %v2979_v22 = vld [vmem:[%s6793_s1 + $0x38] sm:$0xf0] }
  0x98   :  { %1782 = vmatpush.bf16.msra.mxu0 %v3266_v36  ;;  %1839 = vmatpush.bf16.msra.mxu3 %v3650_v40  ;;  %v4270_v36 = vld [vmem:[%s6793_s1 + $0x1cc] sm:$0xf]  ;;  %v3825_v40 = vld [vmem:[%s6793_s1 + $0x6c8] sm:$0xf] }
  0x99   :  { %1753 = vmatmul.bf16.gmra.mxu2 %v4982_v44  ;;  %1772 = vmatmul.bf16.gmra.mxu3 %v4993_v50  ;;  %v3190_v47 = vor.u32 %v4270_v36, %v3187_v37 }
  0x9a   :  { %1821 = vmatpush.bf16.msra.mxu2 %v3506_v49  ;;  %v3826_v49 = vor.u32 %v4432_v41, %v3825_v40  ;;  %v4290_v40 = vld [vmem:[%s6793_s1 + $0x26c] sm:$0xf]  ;;  %v3267_v41 = vld [vmem:[%s6793_s1 + $0x278] sm:$0xf0] }
  0x9b   :  { %1802 = vmatpush.bf16.msra.mxu1 %v3378_v59  ;;  %v4266_v59 = vld [vmem:[%s6793_s1 + $0x1ac] sm:$0xf] }
  0x9c   :  { %1783 = vmatpush.bf16.msra.mxu0 %v3250_v52  ;;  %1840 = vmatpush.bf16.msra.mxu3 %v3634_v60  ;;  %v5771_v52 = vperm.slane %v5744_v33, 0  ;;  %v3171_v60 = vld [vmem:[%s6793_s1 + $0x1b8] sm:$0xf0] }
  0x9d   :  { %v3174_v12 = vor.u32 %v4266_v59, %v3171_v60  ;;  %v3270_v60 = vor.u32 %v4290_v40, %v3267_v41  ;;  %v4278_v40 = vld [vmem:[%s6793_s1 + $0x20c] sm:$0xf]  ;;  %v3219_v41 = vld [vmem:[%s6793_s1 + $0x218] sm:$0xf0] }
  0x9e   :  { %1822 = vmatpush.bf16.msra.mxu2 %v3490_v10 }
  0x9f   :  { %1803 = vmatpush.bf16.msra.mxu1 %v3362_v15  ;;  %v3155_v15 = vld [vmem:[%s6793_s1 + $0x198] sm:$0xf0] }
  0xa0   :  { %1784 = vmatpush.bf16.msra.mxu0 %v3234_v11  ;;  %1841 = vmatpush.bf16.msra.mxu3 %v3618_v16  ;;  %v3158_v25 = vor.u32 %v4262_v14, %v3155_v15  ;;  %v3254_v15 = vor.u32 %v4286_v6, %v3251_v8 }
  0xa1   :  { %v1483_v5 = vpop.f32.mrf.mxu0 }
  0xa2   :  { %1823 = vmatpush.bf16.msra.mxu2 %v3474_v26  ;;  %v1484_v10 = vadd.f32 %v1483_v5, %v5771_v52  ;;  %v1502_v11 = vpop.f32.mrf.mxu1  ;;  %v3794_v26 = vor.u32 %v4424_v20, %v3793_v19  ;;  %v2995_v5 = vld [vmem:[%s6793_s1 + $0x58] sm:$0xf0] }
  0xa3   :  { %1804 = vmatpush.bf16.msra.mxu1 %v3346_v31  ;;  %v3286_v31 = vor.u32 %v4294_v23, %v3283_v24  ;;  %v2998_v14 = vor.u32 %v4222_v4, %v2995_v5  ;;  %v4282_v23 = vld [vmem:[%s6793_s1 + $0x22c] sm:$0xf]  ;;  %v3235_v24 = vld [vmem:[%s6793_s1 + $0x238] sm:$0xf0]  ;;  %v3222_v5 = vor.u32 %v4278_v40, %v3219_v41 }
  0xa4   :  { %1785 = vmatpush.bf16.msra.mxu0 %v3218_v27  ;;  %1842 = vmatpush.bf16.msra.mxu3 %v3602_v32  ;;  %v1503_v16 = vadd.f32 %v1502_v11, %v1484_v10  ;;  %v4258_v27 = vld [vmem:[%s6793_s1 + $0x16c] sm:$0xf]  ;;  %v3777_v32 = vld [vmem:[%s6793_s1 + $0x668] sm:$0xf]  ;;  %v3762_v10 = vor.u32 %v4416_v0, %v3761_v61  ;;  %v3843_v61 = vld [vmem:[%s6793_s1 + $0x6f8] sm:$0xf0] }
  0xa5   :  { %v3142_v46 = vor.u32 %v4258_v27, %v3139_v28  ;;  %v4250_v11 = vld [vmem:[%s6793_s1 + $0x12c] sm:$0xf]  ;;  %v3811_v41 = vld [vmem:[%s6793_s1 + $0x6b8] sm:$0xf0] }
  0xa6   :  { %1892 = vmatpush.bf16.msrb.mxu2 %v3206_v34  ;;  %1805 = vmatmul.bf16.vlgmr.msra.gmra.mxu1 %v4871_v57  ;;  %v4420_v34 = vld [vmem:[%s6793_s1 + $0x674] sm:$0xf0]  ;;  %v4246_v27 = vld [vmem:[%s6793_s1 + $0x10c] sm:$0xf] }
  0xa7   :  { %1873 = vmatpush.bf16.msrb.mxu1 %v3078_v38  ;;  %1786 = vmatmul.bf16.vlgmr.msra.gmra.mxu0 %v4863_v54  ;;  %v4426_v40 = vld [vmem:[%s6793_s1 + $0x6ac] sm:$0xf] }
  0xa8   :  { %1854 = vmatpush.bf16.msrb.mxu0 %v3842_v35  ;;  %1911 = vmatpush.bf16.msrb.mxu3 %v3334_v39  ;;  %v1521_v29 = vpop.f32.mrf.mxu2  ;;  %v4226_v35 = vld [vmem:[%s6793_s1 + $0x6c] sm:$0xf]  ;;  %v3011_v39 = vld [vmem:[%s6793_s1 + $0x78] sm:$0xf0] }
  0xa9   :  { %1824 = vmatmul.bf16.vlgmr.msra.gmra.mxu2 %v5132_v62  ;;  %1843 = vmatmul.bf16.vlgmr.msra.gmra.mxu3 %v5134_v63  ;;  %v1522_v36 = vadd.f32 %v1521_v29, %v1503_v16  ;;  %v1540_v37 = vpop.f32.mrf.mxu3  ;;  %v1485_v38 = vpop.f32.mrf.mxu0  ;;  %v3014_v59 = vor.u32 %v4226_v35, %v3011_v39  ;;  %v3745_v16 = vld [vmem:[%s6793_s1 + $0x628] sm:$0xf]  ;;  %v2963_v39 = vld [vmem:[%s6793_s1 + $0x18] sm:$0xf0] }
  0xaa   :  { %1893 = vmatpush.bf16.msrb.mxu2 %v3190_v47  ;;  %v1486_v42 = vadd.f32 %v1485_v38, %v5771_v52  ;;  %v1504_v43 = vpop.f32.mrf.mxu1  ;;  %v3778_v47 = vor.u32 %v4420_v34, %v3777_v32  ;;  %v3729_v32 = vld [vmem:[%s6793_s1 + $0x608] sm:$0xf]  ;;  %v4408_v34 = vld [vmem:[%s6793_s1 + $0x614] sm:$0xf0]  ;;  %v4214_v38 = vld [vmem:[%s6793_s1 + $0xc] sm:$0xf] }
  0xab   :  { %1874 = vmatpush.bf16.msrb.mxu1 %v3062_v55  ;;  %v5851_v45 = vadd.f32 %v1540_v37, %v1522_v36  ;;  %v3123_v55 = vld [vmem:[%s6793_s1 + $0x158] sm:$0xf0]  ;;  %v3238_v37 = vor.u32 %v4282_v23, %v3235_v24  ;;  %v2966_v4 = vor.u32 %v4214_v38, %v2963_v39 }
  0xac   :  { %1855 = vmatpush.bf16.msrb.mxu0 %v3826_v49  ;;  %1912 = vmatpush.bf16.msrb.mxu3 %v3318_v58  ;;  %v4254_v49 = vld [vmem:[%s6793_s1 + $0x14c] sm:$0xf]  ;;  %v1505_v58 = vadd.f32 %v1504_v43, %v1486_v42  ;;  %v3715_v43 = vld [vmem:[%s6793_s1 + $0x5f8] sm:$0xf0] }
  0xad   :  { %v3126_v9 = vor.u32 %v4254_v49, %v3123_v55  ;;  %v4402_v42 = vld [vmem:[%s6793_s1 + $0x5ec] sm:$0xf]  ;;  %v3827_v23 = vld [vmem:[%s6793_s1 + $0x6d8] sm:$0xf0] }
  0xae   :  { %1894 = vmatpush.bf16.msrb.mxu2 %v3174_v12  ;;  %v3107_v12 = vld [vmem:[%s6793_s1 + $0x138] sm:$0xf0]  ;;  %v4370_v49 = vld [vmem:[%s6793_s1 + $0x4ec] sm:$0xf] }
  0xaf   :  { %1875 = vmatpush.bf16.msrb.mxu1 %v3046_v17  ;;  %v4412_v17 = vld [vmem:[%s6793_s1 + $0x634] sm:$0xf0]  ;;  %v3110_v29 = vor.u32 %v4250_v11, %v3107_v12  ;;  %v4398_v12 = vld [vmem:[%s6793_s1 + $0x5cc] sm:$0xf]  ;;  %v3555_v39 = vld [vmem:[%s6793_s1 + $0x4b8] sm:$0xf0] }
  0xb0   :  { %1856 = vmatpush.bf16.msrb.mxu0 %v3810_v13  ;;  %1913 = vmatpush.bf16.msrb.mxu3 %v3302_v18  ;;  %v1523_v13 = vpop.f32.mrf.mxu2  ;;  %v4218_v18 = vld [vmem:[%s6793_s1 + $0x2c] sm:$0xf] }
  0xb1   :  { %v1524_v19 = vadd.f32 %v1523_v13, %v1505_v58  ;;  %v1542_v20 = vpop.f32.mrf.mxu3  ;;  %v2982_v36 = vor.u32 %v4218_v18, %v2979_v22  ;;  %v3730_v58 = vor.u32 %v4408_v34, %v3729_v32  ;;  %v3699_v13 = vld [vmem:[%s6793_s1 + $0x5d8] sm:$0xf0]  ;;  %v4334_v18 = vld [vmem:[%s6793_s1 + $0x3cc] sm:$0xf] }
  0xb2   :  { %1895 = vmatpush.bf16.msrb.mxu2 %v3158_v25  ;;  %v1488_v21 = vpop.f32.mrf.mxu0  ;;  %v4430_v22 = vld [vmem:[%s6793_s1 + $0x6cc] sm:$0xf] }
  0xb3   :  { %1876 = vmatpush.bf16.msrb.mxu1 %v3030_v30  ;;  %v1489_v25 = vadd.f32 %v1488_v21, %v5771_v52  ;;  %v5905_v28 = vadd.f32 %v1542_v20, %v1524_v19  ;;  %v3746_v30 = vor.u32 %v4412_v17, %v3745_v16  ;;  %v3443_v19 = vld [vmem:[%s6793_s1 + $0x3d8] sm:$0xf0]  ;;  %v4366_v20 = vld [vmem:[%s6793_s1 + $0x4cc] sm:$0xf] }
  0xb4   :  { %1857 = vmatpush.bf16.msrb.mxu0 %v3794_v26  ;;  %1914 = vmatpush.bf16.msrb.mxu3 %v3286_v31  ;;  %v1507_v26 = vpop.f32.mrf.mxu1  ;;  %v3091_v31 = vld [vmem:[%s6793_s1 + $0x118] sm:$0xf0]  ;;  %v4330_v34 = vld [vmem:[%s6793_s1 + $0x3ac] sm:$0xf] }
  0xb5   :  { %v1508_v35 = vadd.f32 %v1507_v26, %v1489_v25  ;;  %v3094_v55 = vor.u32 %v4246_v27, %v3091_v31  ;;  %v3702_v25 = vor.u32 %v4398_v12, %v3699_v13  ;;  %v3446_v26 = vor.u32 %v4334_v18, %v3443_v19  ;;  %v3683_v31 = vld [vmem:[%s6793_s1 + $0x5b8] sm:$0xf0]  ;;  %v4418_v18 = vld [vmem:[%s6793_s1 + $0x66c] sm:$0xf] }
  0xb6   :  { %1896 = vmatpush.bf16.msrb.mxu2 %v3142_v46  ;;  %1810 = vmatmul.bf16.gmra.mxu1 %v5003_v56  ;;  %v4338_v46 = vld [vmem:[%s6793_s1 + $0x3ec] sm:$0xf]  ;;  %v3779_v19 = vld [vmem:[%s6793_s1 + $0x678] sm:$0xf0] }
  0xb7   :  { %1877 = vmatpush.bf16.msrb.mxu1 %v3014_v59  ;;  %1791 = vmatmul.bf16.gmra.mxu0 %v4995_v51  ;;  %v3587_v59 = vld [vmem:[%s6793_s1 + $0x4f8] sm:$0xf0] }
  0xb8   :  { %1858 = vmatpush.bf16.msrb.mxu0 %v3778_v47  ;;  %1915 = vmatpush.bf16.msrb.mxu3 %v3270_v60  ;;  %v3459_v47 = vld [vmem:[%s6793_s1 + $0x3f8] sm:$0xf0]  ;;  %v4434_v60 = vld [vmem:[%s6793_s1 + $0x6ec] sm:$0xf]  ;;  %v3590_v16 = vor.u32 %v4370_v49, %v3587_v59 }
  0xb9   :  { %1829 = vmatmul.bf16.gmra.mxu2 %v5256_v1  ;;  %1848 = vmatmul.bf16.gmra.mxu3 %v5258_v2  ;;  %v1545_v8 = vpop.f32.mrf.mxu3  ;;  %v3462_v11 = vor.u32 %v4338_v46, %v3459_v47  ;;  %v3846_v17 = vor.u32 %v4434_v60, %v3843_v61  ;;  %v3814_v60 = vor.u32 %v4426_v40, %v3811_v41  ;;  %v4326_v61 = vld [vmem:[%s6793_s1 + $0x38c] sm:$0xf]  ;;  %v3619_v41 = vld [vmem:[%s6793_s1 + $0x538] sm:$0xf0] }
  0xba   :  { %1897 = vmatpush.bf16.msrb.mxu2 %v3126_v9  ;;  %v1526_v0 = vpop.f32.mrf.mxu2  ;;  %v1490_v9 = vpop.f32.mrf.mxu0  ;;  %v4378_v40 = vld [vmem:[%s6793_s1 + $0x52c] sm:$0xf] }
  0xbb   :  { %1878 = vmatpush.bf16.msrb.mxu1 %v2998_v14  ;;  %v1527_v6 = vadd.f32 %v1526_v0, %v1508_v35  ;;  %v1491_v14 = vadd.f32 %v1490_v9, %v5771_v52  ;;  %v3571_v52 = vld [vmem:[%s6793_s1 + $0x4d8] sm:$0xf0] }
  0xbc   :  { %1859 = vmatpush.bf16.msrb.mxu0 %v3762_v10  ;;  %1916 = vmatpush.bf16.msrb.mxu3 %v3254_v15  ;;  %v3718_v10 = vor.u32 %v4402_v42, %v3715_v43  ;;  %v1509_v15 = vpop.f32.mrf.mxu1  ;;  %v3574_v27 = vor.u32 %v4366_v20, %v3571_v52  ;;  %v3427_v35 = vld [vmem:[%s6793_s1 + $0x3b8] sm:$0xf0] }
  0xbd   :  { %v5972_v21 = vadd.f32 %v1545_v8, %v1527_v6  ;;  %v1510_v24 = vadd.f32 %v1509_v15, %v1491_v14  ;;  %v3430_v49 = vor.u32 %v4330_v34, %v3427_v35  ;;  %v3411_v0 = vld [vmem:[%s6793_s1 + $0x398] sm:$0xf0]  ;;  %v4422_v6 = vld [vmem:[%s6793_s1 + $0x68c] sm:$0xf] }
  0xbe   :  { %1898 = vmatpush.bf16.msrb.mxu2 %v3110_v29  ;;  %v3830_v29 = vor.u32 %v4430_v22, %v3827_v23  ;;  %v3795_v8 = vld [vmem:[%s6793_s1 + $0x698] sm:$0xf0]  ;;  %v4354_v14 = vld [vmem:[%s6793_s1 + $0x46c] sm:$0xf] }
  0xbf   :  { %1879 = vmatpush.bf16.msrb.mxu1 %v2982_v36  ;;  %v4362_v36 = vld [vmem:[%s6793_s1 + $0x4ac] sm:$0xf]  ;;  %v3798_v13 = vor.u32 %v4422_v6, %v3795_v8  ;;  %v3507_v34 = vld [vmem:[%s6793_s1 + $0x458] sm:$0xf0] }
  0xc0   :  { %1860 = vmatpush.bf16.msrb.mxu0 %v3746_v30  ;;  %1917 = vmatpush.bf16.msrb.mxu3 %v3238_v37  ;;  %v4394_v30 = vld [vmem:[%s6793_s1 + $0x5ac] sm:$0xf]  ;;  %v3558_v59 = vor.u32 %v4362_v36, %v3555_v39  ;;  %v3763_v35 = vld [vmem:[%s6793_s1 + $0x658] sm:$0xf0] }
  0xc1   :  { %v1547_v38 = vpop.f32.mrf.mxu3  ;;  %v3686_v47 = vor.u32 %v4394_v30, %v3683_v31  ;;  %v3782_v30 = vor.u32 %v4418_v18, %v3779_v19  ;;  %v3379_v31 = vld [vmem:[%s6793_s1 + $0x358] sm:$0xf0]  ;;  %v4406_v19 = vld [vmem:[%s6793_s1 + $0x60c] sm:$0xf] }
  0xc2   :  { %1899 = vmatpush.bf16.msrb.mxu2 %v3094_v55  ;;  %v1528_v32 = vpop.f32.mrf.mxu2  ;;  %v4390_v55 = vld [vmem:[%s6793_s1 + $0x58c] sm:$0xf]  ;;  %v3475_v18 = vld [vmem:[%s6793_s1 + $0x418] sm:$0xf0] }
  0xc3   :  { %1880 = vmatpush.bf16.msrb.mxu1 %v2966_v4  ;;  %v1529_v37 = vadd.f32 %v1528_v32, %v1510_v24  ;;  %v4358_v4 = vld [vmem:[%s6793_s1 + $0x48c] sm:$0xf] }
  0xc4   :  { %1861 = vmatpush.bf16.msrb.mxu0 %v3730_v58  ;;  %1918 = vmatpush.bf16.msrb.mxu3 %v3222_v5  ;;  %v1559_v42 = vpop.f32.mrf.mxu0  ;;  %v1578_v43 = vpop.f32.mrf.mxu1  ;;  %v3667_v58 = vld [vmem:[%s6793_s1 + $0x598] sm:$0xf0]  ;;  %v4350_v32 = vld [vmem:[%s6793_s1 + $0x44c] sm:$0xf] }
  0xc5   :  { %v6007_v46 = vadd.f32 %v1547_v38, %v1529_v37  ;;  %v3539_v5 = vld [vmem:[%s6793_s1 + $0x498] sm:$0xf0]  ;;  %v3670_v9 = vor.u32 %v4390_v55, %v3667_v58  ;;  %v1560_v20 = vadd.f32 %v1559_v42, %v5851_v45  ;;  %v3510_v39 = vor.u32 %v4350_v32, %v3507_v34  ;;  %v4346_v58 = vld [vmem:[%s6793_s1 + $0x42c] sm:$0xf] }
  0xc6   :  { %1968 = vmatpush.bf16.msra.mxu2 %v3718_v10  ;;  %1881 = vmatmul.bf16.vlgmr.msrb.gmra.mxu1 %v4850_v48  ;;  %v3414_v48 = vor.u32 %v4326_v61, %v3411_v0  ;;  %v4386_v10 = vld [vmem:[%s6793_s1 + $0x56c] sm:$0xf]  ;;  %v3542_v12 = vor.u32 %v4358_v4, %v3539_v5  ;;  %v3363_v55 = vld [vmem:[%s6793_s1 + $0x338] sm:$0xf0] }
  0xc7   :  { %1949 = vmatpush.bf16.msra.mxu1 %v3590_v16  ;;  %1862 = vmatmul.bf16.vlgmr.msrb.gmra.mxu0 %v5145_v3  ;;  %v1579_v36 = vadd.f32 %v1578_v43, %v1560_v20  ;;  %v4314_v43 = vld [vmem:[%s6793_s1 + $0x32c] sm:$0xf]  ;;  %v3491_v61 = vld [vmem:[%s6793_s1 + $0x438] sm:$0xf0] }
  0xc8   :  { %1930 = vmatpush.bf16.msra.mxu0 %v3462_v11  ;;  %1987 = vmatpush.bf16.msra.mxu3 %v3846_v17  ;;  %v3651_v11 = vld [vmem:[%s6793_s1 + $0x578] sm:$0xf0]  ;;  %v4410_v0 = vld [vmem:[%s6793_s1 + $0x62c] sm:$0xf] }
  0xc9   :  { %1900 = vmatmul.bf16.vlgmr.msrb.gmra.mxu2 %v4861_v53  ;;  %1919 = vmatmul.bf16.vlgmr.msrb.gmra.mxu3 %v4863_v54  ;;  %v4322_v53 = vld [vmem:[%s6793_s1 + $0x36c] sm:$0xf]  ;;  %v3395_v54 = vld [vmem:[%s6793_s1 + $0x378] sm:$0xf0]  ;;  %v3654_v23 = vor.u32 %v4386_v10, %v3651_v11  ;;  %v3366_v10 = vor.u32 %v4314_v43, %v3363_v55  ;;  %v4464_v43 = vld [vmem:[%s6796_s3 + $0xd4] sm:$0xf0] }
  0xca   :  { %1969 = vmatpush.bf16.msra.mxu2 %v3702_v25  ;;  %v3523_v17 = vld [vmem:[%s6793_s1 + $0x478] sm:$0xf0]  ;;  %v3398_v24 = vor.u32 %v4322_v53, %v3395_v54  ;;  %v4382_v25 = vld [vmem:[%s6793_s1 + $0x54c] sm:$0xf] }
  0xcb   :  { %1950 = vmatpush.bf16.msra.mxu1 %v3574_v27  ;;  %v4318_v27 = vld [vmem:[%s6793_s1 + $0x34c] sm:$0xf]  ;;  %v3747_v4 = vld [vmem:[%s6793_s1 + $0x638] sm:$0xf0] }
  0xcc   :  { %1931 = vmatpush.bf16.msra.mxu0 %v3446_v26  ;;  %1988 = vmatpush.bf16.msra.mxu3 %v3830_v29  ;;  %v1597_v15 = vpop.f32.mrf.mxu2  ;;  %v6052_v16 = vpop.f32.mrf.mxu3  ;;  %v3635_v26 = vld [vmem:[%s6793_s1 + $0x558] sm:$0xf0]  ;;  %v3526_v29 = vor.u32 %v4354_v14, %v3523_v17  ;;  %v3382_v38 = vor.u32 %v4318_v27, %v3379_v31  ;;  %v3494_v14 = vor.u32 %v4346_v58, %v3491_v61  ;;  %v4342_v17 = vld [vmem:[%s6793_s1 + $0x40c] sm:$0xf] }
  0xcd   :  { %v1561_v52 = vpop.f32.mrf.mxu0  ;;  %v1580_v22 = vpop.f32.mrf.mxu1  ;;  %v3638_v37 = vor.u32 %v4382_v25, %v3635_v26  ;;  %v1598_v42 = vadd.f32 %v1597_v15, %v1579_v36  ;;  %v3603_v11 = vld [vmem:[%s6793_s1 + $0x518] sm:$0xf0]  ;;  %v3750_v15 = vor.u32 %v4410_v0, %v3747_v4  ;;  %v3961_v36 = vld [vmem:[%s6796_s3 + $0xe0] sm:$0xf] }
  0xce   :  { %1970 = vmatpush.bf16.msra.mxu2 %v3686_v47  ;;  %v1562_v45 = vadd.f32 %v1561_v52, %v5905_v28  ;;  %v4414_v28 = vld [vmem:[%s6793_s1 + $0x64c] sm:$0xf]  ;;  %v3731_v20 = vld [vmem:[%s6793_s1 + $0x618] sm:$0xf0]  ;;  %v3905_v52 = vld [vmem:[%s6796_s3 + $0x70] sm:$0xf] }
  0xcf   :  { %1951 = vmatpush.bf16.msra.mxu1 %v3558_v59  ;;  %v2006_v53 = vmax.f32 %v1598_v42, 0.0 }
  0xd0   :  { %1932 = vmatpush.bf16.msra.mxu0 %v3430_v49  ;;  %1989 = vmatpush.bf16.msra.mxu3 %v3814_v60  ;;  %v1581_v47 = vadd.f32 %v1580_v22, %v1562_v45  ;;  %v3766_v49 = vor.u32 %v4414_v28, %v3763_v35  ;;  %v4450_v35 = vld [vmem:[%s6796_s3 + $0x64] sm:$0xf0] }
  0xd2   :  { %1971 = vmatpush.bf16.msra.mxu2 %v3670_v9  ;;  %v4374_v9 = vld [vmem:[%s6793_s1 + $0x50c] sm:$0xf] }
  0xd3   :  { %1952 = vmatpush.bf16.msra.mxu1 %v3542_v12  ;;  %v4310_v12 = vld [vmem:[%s6793_s1 + $0x30c] sm:$0xf]  ;;  %v3606_v25 = vor.u32 %v4374_v9, %v3603_v11  ;;  %v4462_v11 = vld [vmem:[%s6796_s3 + $0xc4] sm:$0xf0] }
  0xd4   :  { %1933 = vmatpush.bf16.msra.mxu0 %v3414_v48  ;;  %1990 = vmatpush.bf16.msra.mxu3 %v3798_v13  ;;  %v1599_v59 = vpop.f32.mrf.mxu2  ;;  %v6104_v60 = vpop.f32.mrf.mxu3  ;;  %v3622_v48 = vor.u32 %v4378_v40, %v3619_v41  ;;  %v3347_v13 = vld [vmem:[%s6793_s1 + $0x318] sm:$0xf0]  ;;  %v3889_v41 = vld [vmem:[%s6796_s3 + $0x50] sm:$0xf] }
  0xd5   :  { %v1600_v5 = vadd.f32 %v1599_v59, %v1581_v47  ;;  %v1564_v6 = vpop.f32.mrf.mxu0  ;;  %v1583_v8 = vpop.f32.mrf.mxu1  ;;  %v3350_v26 = vor.u32 %v4310_v12, %v3347_v13 }
  0xd6   :  { %1972 = vmatpush.bf16.msra.mxu2 %v3654_v23  ;;  %1886 = vmatmul.bf16.gmra.mxu1 %v4982_v44  ;;  %v4452_v44 = vld [vmem:[%s6796_s3 + $0x74] sm:$0xf0]  ;;  %v3969_v23 = vld [vmem:[%s6796_s3 + $0xf0] sm:$0xf]  ;;  %v1565_v32 = vadd.f32 %v1564_v6, %v5972_v21  ;;  %v4446_v6 = vld [vmem:[%s6796_s3 + $0x44] sm:$0xf0] }
  0xd7   :  { %1953 = vmatpush.bf16.msra.mxu1 %v3526_v29  ;;  %v2010_v54 = vmax.f32 %v1600_v5, 0.0  ;;  %1867 = vmatmul.bf16.gmra.mxu0 %v5269_v7  ;;  %v3906_v29 = vor.u32 %v4452_v44, %v3905_v52  ;;  %v3881_v5 = vld [vmem:[%s6796_s3 + $0x40] sm:$0xf]  ;;  %v4442_v52 = vld [vmem:[%s6796_s3 + $0x24] sm:$0xf0] }
  0xd8   :  { %1934 = vmatpush.bf16.msra.mxu0 %v3398_v24  ;;  %1991 = vmatpush.bf16.msra.mxu3 %v3782_v30  ;;  %v4468_v24 = vld [vmem:[%s6796_s3 + $0xf4] sm:$0xf0]  ;;  %v3897_v30 = vld [vmem:[%s6796_s3 + $0x60] sm:$0xf]  ;;  %v1584_v40 = vadd.f32 %v1583_v8, %v1565_v32  ;;  %v3882_v13 = vor.u32 %v4446_v6, %v3881_v5 }
  0xd9   :  { %v6144_v22 = vpack.c.bf16 %v2010_v54, %v2006_v53  ;;  %1905 = vmatmul.bf16.gmra.mxu2 %v4993_v50  ;;  %1924 = vmatmul.bf16.gmra.mxu3 %v4995_v51  ;;  %v3478_v50 = vor.u32 %v4342_v17, %v3475_v18  ;;  %v3734_v51 = vor.u32 %v4406_v19, %v3731_v20  ;;  %v3873_v53 = vld [vmem:[%s6796_s3 + $0x30] sm:$0xf]  ;;  %v3865_v19 = vld [vmem:[%s6796_s3 + $0x20] sm:$0xf] }
  0xda   :  { %1973 = vmatpush.bf16.msra.mxu2 %v3638_v37  ;;  %v3970_v31 = vor.u32 %v4468_v24, %v3969_v23  ;;  %v4466_v37 = vld [vmem:[%s6796_s3 + $0xe4] sm:$0xf0]  ;;  %v3898_v21 = vor.u32 %v4450_v35, %v3897_v30  ;;  %v3929_v44 = vld [vmem:[%s6796_s3 + $0xa0] sm:$0xf]  ;;  %v3866_v24 = vor.u32 %v4442_v52, %v3865_v19  ;;  %v3947_v19 = vld [vmem:[%s6796_s3 + $0xc8] sm:$0xf0] }
  0xdb   :  { %1954 = vmatpush.bf16.msra.mxu1 %v3510_v39  ;;  %v3962_v39 = vor.u32 %v4466_v37, %v3961_v36  ;;  %v4458_v23 = vld [vmem:[%s6796_s3 + $0xa4] sm:$0xf0]  ;;  %v3849_v35 = vld [vmem:[%s6796_s3] sm:$0xf] }
  0xdc   :  { %1935 = vmatpush.bf16.msra.mxu0 %v3382_v38  ;;  %1992 = vmatpush.bf16.msra.mxu3 %v3766_v49  ;;  %v1602_v27 = vpop.f32.mrf.mxu2  ;;  %v6157_v45 = vpop.f32.mrf.mxu3  ;;  %v4448_v49 = vld [vmem:[%s6796_s3 + $0x54] sm:$0xf0]  ;;  %v4438_v36 = vld [vmem:[%s6796_s3 + $0x4] sm:$0xf0] }
  0xdd   :  { %v1566_v34 = vpop.f32.mrf.mxu0  ;;  %v1585_v28 = vpop.f32.mrf.mxu1  ;;  %v1603_v42 = vadd.f32 %v1602_v27, %v1584_v40  ;;  %v3890_v4 = vor.u32 %v4448_v49, %v3889_v41  ;;  %v4456_v27 = vld [vmem:[%s6796_s3 + $0x94] sm:$0xf0]  ;;  %v4467_v40 = vld [vmem:[%s6796_s3 + $0xf4] sm:$0xf]  ;;  %v3971_v41 = vld [vmem:[%s6796_s3 + $0xf8] sm:$0xf0] }
  0xde   :  { %1974 = vmatpush.bf16.msra.mxu2 %v3622_v48  ;;  %v1567_v38 = vadd.f32 %v1566_v34, %v6007_v46  ;;  %v3953_v46 = vld [vmem:[%s6796_s3 + $0xd0] sm:$0xf]  ;;  %v6262_v34 = vperm.slane %v5744_v33, 1  ;;  %v3913_v33 = vld [vmem:[%s6796_s3 + $0x80] sm:$0xf]  ;;  %v3974_v49 = vor.u32 %v4467_v40, %v3971_v41 }
  0xdf   :  { %1955 = vmatpush.bf16.msra.mxu1 %v3494_v14  ;;  %v3954_v8 = vor.u32 %v4464_v43, %v3953_v46  ;;  %v2014_v9 = vmax.f32 %v1603_v42, 0.0 }
  0xe0   :  { %1936 = vmatpush.bf16.msra.mxu0 %v3366_v10  ;;  %1993 = vmatpush.bf16.msra.mxu3 %v3750_v15  ;;  %v1586_v47 = vadd.f32 %v1585_v28, %v1567_v38  ;;  %v3945_v10 = vld [vmem:[%s6796_s3 + $0xc0] sm:$0xf]  ;;  %v4451_v38 = vld [vmem:[%s6796_s3 + $0x74] sm:$0xf]  ;;  %v1617_v46 = vadd.f32 %v6052_v16, %v6262_v34 }
  0xe1   :  { %v3946_v54 = vor.u32 %v4462_v11, %v3945_v10  ;;  %v3891_v10 = vld [vmem:[%s6796_s3 + $0x58] sm:$0xf0] }
  0xe2   :  { %1975 = vmatpush.bf16.msra.mxu2 %v3606_v25  ;;  %v3857_v25 = vld [vmem:[%s6796_s3 + $0x10] sm:$0xf]  ;;  %v3955_v11 = vld [vmem:[%s6796_s3 + $0xd8] sm:$0xf0] }
  0xe3   :  { %1956 = vmatpush.bf16.msra.mxu1 %v3478_v50  ;;  %v4440_v50 = vld [vmem:[%s6796_s3 + $0x14] sm:$0xf0] }
  0xe4   :  { %1937 = vmatpush.bf16.msra.mxu0 %v3350_v26  ;;  %1994 = vmatpush.bf16.msra.mxu3 %v3734_v51  ;;  %v1604_v55 = vpop.f32.mrf.mxu2  ;;  %v6185_v58 = vpop.f32.mrf.mxu3  ;;  %v3930_v26 = vor.u32 %v4458_v23, %v3929_v44  ;;  %v3921_v51 = vld [vmem:[%s6796_s3 + $0x90] sm:$0xf]  ;;  %v3858_v28 = vor.u32 %v4440_v50, %v3857_v25  ;;  %v4443_v23 = vld [vmem:[%s6796_s3 + $0x34] sm:$0xf]  ;;  %v3875_v50 = vld [vmem:[%s6796_s3 + $0x38] sm:$0xf0] }
  0xe5   :  { %v1605_v59 = vadd.f32 %v1604_v55, %v1586_v47  ;;  %v6187_v61 = vpop.f32.mrf.mxu0  ;;  %v6189_v0 = vpop.f32.mrf.mxu1  ;;  %v3922_v37 = vor.u32 %v4456_v27, %v3921_v51  ;;  %v4449_v47 = vld [vmem:[%s6796_s3 + $0x64] sm:$0xf]  ;;  %v3939_v51 = vld [vmem:[%s6796_s3 + $0xb8] sm:$0xf0] }
  0xe6   :  { %1957 = vmatmul.bf16.vlgmr.msra.gmra.mxu1 %v5132_v62  ;;  %v3937_v62 = vld [vmem:[%s6796_s3 + $0xb0] sm:$0xf]  ;;  %v1636_v16 = vadd.f32 %v6187_v61, %v1617_v46  ;;  %v4463_v61 = vld [vmem:[%s6796_s3 + $0xd4] sm:$0xf] }
  0xe7   :  { %2439 = vmatpush.bf16.msrb.mxu1 %v3970_v31  ;;  %v2018_v48 = vmax.f32 %v1605_v59, 0.0  ;;  %1938 = vmatmul.bf16.vlgmr.msra.gmra.mxu0 %v4871_v57  ;;  %v4444_v57 = vld [vmem:[%s6796_s3 + $0x34] sm:$0xf0]  ;;  %v3963_v59 = vld [vmem:[%s6796_s3 + $0xe8] sm:$0xf0] }
  0xe8   :  { %2420 = vmatpush.bf16.msrb.mxu0 %v3906_v29  ;;  %v3874_v18 = vor.u32 %v4444_v57, %v3873_v53  ;;  %v3958_v57 = vor.u32 %v4463_v61, %v3955_v11 }
  0xe9   :  { %1976 = vmatmul.bf16.vlgmr.msra.gmra.mxu2 %v5134_v63  ;;  %1995 = vmatmul.bf16.vlgmr.msra.gmra.mxu3 %v5145_v3  ;;  %v6207_v12 = vpack.c.bf16 %v2018_v48, %v2014_v9  ;;  %v4460_v63 = vld [vmem:[%s6796_s3 + $0xb4] sm:$0xf0]  ;;  %v1619_v48 = vadd.f32 %v6104_v60, %v6262_v34  ;;  %v4445_v60 = vld [vmem:[%s6796_s3 + $0x44] sm:$0xf] }
  0xea   :  { %v3938_v20 = vor.u32 %v4460_v63, %v3937_v62 }
  0xeb   :  { %2440 = vmatpush.bf16.msrb.mxu1 %v3962_v39  ;;  %v3907_v39 = vld [vmem:[%s6796_s3 + $0x78] sm:$0xf0] }
  0xec   :  { %2421 = vmatpush.bf16.msrb.mxu0 %v3898_v21  ;;  %v6221_v3 = vpop.f32.mrf.mxu2  ;;  %v6223_v14 = vpop.f32.mrf.mxu3  ;;  %v4454_v21 = vld [vmem:[%s6796_s3 + $0x84] sm:$0xf0]  ;;  %v3910_v42 = vor.u32 %v4451_v38, %v3907_v39  ;;  %v3931_v39 = vld [vmem:[%s6796_s3 + $0xa8] sm:$0xf0] }
  0xed   :  { %v6225_v15 = vpop.f32.mrf.mxu0  ;;  %v6227_v17 = vpop.f32.mrf.mxu1 }
  0xee   :  { %v1638_v53 = vadd.f32 %v6225_v15, %v1619_v48  ;;  %v4461_v15 = vld [vmem:[%s6796_s3 + $0xc4] sm:$0xf]  ;;  %v4033_v48 = vld [vmem:[%s6796_s3 + $0x170] sm:$0xf] }
  0xef   :  { %2441 = vmatpush.bf16.msrb.mxu1 %v3954_v8  ;;  %v4447_v8 = vld [vmem:[%s6796_s3 + $0x54] sm:$0xf] }
  0xf0   :  { %2422 = vmatpush.bf16.msrb.mxu0 %v3890_v4 }
  0xf3   :  { %2442 = vmatpush.bf16.msrb.mxu1 %v3946_v54  ;;  %v3894_v54 = vor.u32 %v4447_v8, %v3891_v10 }
  0xf4   :  { %2423 = vmatpush.bf16.msrb.mxu0 %v3882_v13  ;;  %v6253_v29 = vpop.f32.mrf.mxu2  ;;  %v6255_v30 = vpop.f32.mrf.mxu3  ;;  %v1655_v13 = vadd.f32 %v6189_v0, %v1636_v16  ;;  %v3883_v0 = vld [vmem:[%s6796_s3 + $0x48] sm:$0xf0] }
  0xf5   :  { %v6257_v31 = vpop.f32.mrf.mxu0  ;;  %v6259_v32 = vpop.f32.mrf.mxu1  ;;  %v3886_v44 = vor.u32 %v4445_v60, %v3883_v0 }
  0xf6   :  { %1962 = vmatmul.bf16.gmra.mxu1 %v5256_v1  ;;  %v3914_v1 = vor.u32 %v4454_v21, %v3913_v33  ;;  %v1674_v62 = vadd.f32 %v6221_v3, %v1655_v13  ;;  %v1657_v3 = vadd.f32 %v6227_v17, %v1638_v53  ;;  %v4459_v17 = vld [vmem:[%s6796_s3 + $0xb4] sm:$0xf]  ;;  %v3867_v33 = vld [vmem:[%s6796_s3 + $0x28] sm:$0xf0]  ;;  %v4457_v21 = vld [vmem:[%s6796_s3 + $0xa4] sm:$0xf] }
  0xf7   :  { %2443 = vmatpush.bf16.msrb.mxu1 %v3938_v20  ;;  %1943 = vmatmul.bf16.gmra.mxu0 %v5003_v56  ;;  %v3850_v56 = vor.u32 %v4438_v36, %v3849_v35  ;;  %v1622_v35 = vadd.f32 %v6157_v45, %v6262_v34  ;;  %v3851_v13 = vld [vmem:[%s6796_s3 + $0x8] sm:$0xf0]  ;;  %v4453_v53 = vld [vmem:[%s6796_s3 + $0x84] sm:$0xf] }
  0xf8   :  { %2424 = vmatpush.bf16.msrb.mxu0 %v3874_v18  ;;  %v1693_v25 = vadd.f32 %v6223_v14, %v1674_v62  ;;  %v4441_v14 = vld [vmem:[%s6796_s3 + $0x24] sm:$0xf] }
  0xf9   :  { %1981 = vmatmul.bf16.gmra.mxu2 %v5258_v2  ;;  %2000 = vmatmul.bf16.gmra.mxu3 %v5269_v7  ;;  %v3899_v2 = vld [vmem:[%s6796_s3 + $0x68] sm:$0xf0]  ;;  %v4465_v7 = vld [vmem:[%s6796_s3 + $0xe4] sm:$0xf] }
  0xfa   :  { %v3902_v6 = vor.u32 %v4449_v47, %v3899_v2  ;;  %v3966_v9 = vor.u32 %v4465_v7, %v3963_v59  ;;  %v3934_v47 = vor.u32 %v4457_v21, %v3931_v39  ;;  %v3859_v2 = vld [vmem:[%s6796_s3 + $0x18] sm:$0xf0]  ;;  %v4476_v21 = vld [vmem:[%s6796_s3 + $0x134] sm:$0xf0] }
  0xfb   :  { %2444 = vmatpush.bf16.msrb.mxu1 %v3930_v26  ;;  %v1676_v26 = vadd.f32 %v6253_v29, %v1657_v3  ;;  %v3942_v29 = vor.u32 %v4459_v17, %v3939_v51  ;;  %v3923_v7 = vld [vmem:[%s6796_s3 + $0x98] sm:$0xf0] }
  0xfc   :  { %2425 = vmatpush.bf16.msrb.mxu0 %v3866_v24  ;;  %v6297_v43 = vpop.f32.mrf.mxu2  ;;  %v6299_v55 = vpop.f32.mrf.mxu3  ;;  %v3950_v24 = vor.u32 %v4461_v15, %v3947_v19  ;;  %v4025_v19 = vld [vmem:[%s6796_s3 + $0x160] sm:$0xf] }
  0xfd   :  { %v6310_v4 = vpop.f32.mrf.mxu0  ;;  %v6312_v5 = vpop.f32.mrf.mxu1  ;;  %v1695_v36 = vadd.f32 %v6255_v30, %v1676_v26  ;;  %v1641_v30 = vadd.f32 %v6257_v31, %v1622_v35  ;;  %v4455_v31 = vld [vmem:[%s6796_s3 + $0x94] sm:$0xf] }
  0xff   :  { %2445 = vmatpush.bf16.msrb.mxu1 %v3922_v37  ;;  %v1660_v59 = vadd.f32 %v6259_v32, %v1641_v30  ;;  %v4484_v32 = vld [vmem:[%s6796_s3 + $0x174] sm:$0xf0] }
 0x100   :  { %2426 = vmatpush.bf16.msrb.mxu0 %v3858_v28  ;;  %v3878_v28 = vor.u32 %v4443_v23, %v3875_v50  ;;  %v4034_v60 = vor.u32 %v4484_v32, %v4033_v48  ;;  %v4017_v23 = vld [vmem:[%s6796_s3 + $0x150] sm:$0xf] }
 0x102   :  { %2458 = vmatpush.bf16.msrb.mxu2 %v4034_v60  ;;  %v4481_v60 = vld [vmem:[%s6796_s3 + $0x164] sm:$0xf] }
 0x103   :  { %2446 = vmatpush.bf16.msrb.mxu1 %v3914_v1  ;;  %v3870_v1 = vor.u32 %v4441_v14, %v3867_v33  ;;  %v4478_v14 = vld [vmem:[%s6796_s3 + $0x144] sm:$0xf0]  ;;  %v4001_v33 = vld [vmem:[%s6796_s3 + $0x130] sm:$0xf] }
 0x104   :  { %2427 = vmatpush.bf16.msrb.mxu0 %v3850_v56  ;;  %v6335_v63 = vpop.f32.mrf.mxu2  ;;  %v6337_v18 = vpop.f32.mrf.mxu3  ;;  %v4002_v30 = vor.u32 %v4476_v21, %v4001_v33  ;;  %v4003_v33 = vld [vmem:[%s6796_s3 + $0x138] sm:$0xf0] }
 0x105   :  { %v1711_v20 = vpop.f32.mrf.mxu0  ;;  %v1730_v52 = vpop.f32.mrf.mxu1 }
 0x106   :  { %v1712_v27 = vadd.f32 %v1711_v20, %v1693_v25  ;;  %v4482_v20 = vld [vmem:[%s6796_s3 + $0x164] sm:$0xf0] }
 0x107   :  { %2515 = vmatpush.bf16.msra.mxu1 %v3974_v49  ;;  %2428 = vmatmul.bf16.vlgmr.msrb.gmra.mxu0 %v6144_v22  ;;  %v1624_v49 = vadd.f32 %v6185_v58, %v6262_v34  ;;  %v4437_v34 = vld [vmem:[%s6796_s3 + $0x4] sm:$0xf] }
 0x108   :  { %2496 = vmatpush.bf16.msra.mxu0 %v3910_v42  ;;  %v1731_v41 = vadd.f32 %v1730_v52, %v1712_v27  ;;  %v4439_v42 = vld [vmem:[%s6796_s3 + $0x14] sm:$0xf]  ;;  %v3854_v0 = vor.u32 %v4437_v34, %v3851_v13  ;;  %v4035_v34 = vld [vmem:[%s6796_s3 + $0x178] sm:$0xf0] }
 0x109   :  { %v1643_v16 = vadd.f32 %v6310_v4, %v1624_v49  ;;  %v3862_v58 = vor.u32 %v4439_v42, %v3859_v2  ;;  %v1679_v4 = vadd.f32 %v6297_v43, %v1660_v59  ;;  %v4474_v42 = vld [vmem:[%s6796_s3 + $0x124] sm:$0xf0]  ;;  %v3985_v49 = vld [vmem:[%s6796_s3 + $0x110] sm:$0xf] }
 0x10b   :  { %2516 = vmatpush.bf16.msra.mxu1 %v3966_v9  ;;  %v3926_v9 = vor.u32 %v4455_v31, %v3923_v7  ;;  %v1662_v62 = vadd.f32 %v6312_v5, %v1643_v16  ;;  %v1698_v52 = vadd.f32 %v6299_v55, %v1679_v4  ;;  %v4026_v5 = vor.u32 %v4482_v20, %v4025_v19 }
 0x10c   :  { %2497 = vmatpush.bf16.msra.mxu0 %v3902_v6  ;;  %v6370_v37 = vpop.f32.mrf.mxu2  ;;  %v6372_v38 = vpop.f32.mrf.mxu3  ;;  %v2007_v6 = vmax.f32 %v1731_v41, 0.0 }
 0x10d   :  { %v1713_v40 = vpop.f32.mrf.mxu0  ;;  %v1732_v45 = vpop.f32.mrf.mxu1  ;;  %v1681_v3 = vadd.f32 %v6335_v63, %v1662_v62  ;;  %2459 = vmatpush.bf16.msrb.mxu2 %v4026_v5 }
 0x10e   :  { %v1714_v56 = vadd.f32 %v1713_v40, %v1695_v36 }
 0x10f   :  { %2517 = vmatpush.bf16.msra.mxu1 %v3958_v57  ;;  %v1700_v25 = vadd.f32 %v6337_v18, %v1681_v3 }
 0x110   :  { %2498 = vmatpush.bf16.msra.mxu0 %v3894_v54  ;;  %v1733_v46 = vadd.f32 %v1732_v45, %v1714_v56  ;;  %v3915_v54 = vld [vmem:[%s6796_s3 + $0x88] sm:$0xf0] }
 0x111   :  { %v3918_v15 = vor.u32 %v4453_v53, %v3915_v54  ;;  %v6506_v53 = vld [vmem:[%s6795_s2] sm:$0xf] }
 0x112   :  { %v2011_v8 = vmax.f32 %v1733_v46, 0.0  ;;  %v4472_v46 = vld [vmem:[%s6796_s3 + $0x114] sm:$0xf0]  ;;  %v276_v54 = vperm.slane %v6506_v53, 2 }
 0x113   :  { %2518 = vmatpush.bf16.msra.mxu1 %v3950_v24  ;;  %v4480_v24 = vld [vmem:[%s6796_s3 + $0x154] sm:$0xf0]  ;;  %v3986_v7 = vor.u32 %v4472_v46, %v3985_v49  ;;  %v4473_v49 = vld [vmem:[%s6796_s3 + $0x124] sm:$0xf] }
 0x114   :  { %2499 = vmatpush.bf16.msra.mxu0 %v3886_v44  ;;  %v6410_v10 = vpack.c.bf16 %v2011_v8, %v2007_v6  ;;  %v6412_v61 = vpop.f32.mrf.mxu2  ;;  %v6414_v11 = vpop.f32.mrf.mxu3  ;;  %v4018_v26 = vor.u32 %v4480_v24, %v4017_v23  ;;  %v4470_v6 = vld [vmem:[%s6796_s3 + $0x104] sm:$0xf0]  ;;  %v1750_v62 = vadd.f32 %v6370_v37, %v276_v54 }
 0x115   :  { %v1716_v43 = vpop.f32.mrf.mxu0  ;;  %v1735_v57 = vpop.f32.mrf.mxu1  ;;  %v1752_v19 = vadd.f32 %v6412_v61, %v276_v54  ;;  %v4089_v61 = vld [vmem:[%s6796_s3 + $0x1e0] sm:$0xf]  ;;  %v4498_v24 = vld [vmem:[%s6796_s3 + $0x1e4] sm:$0xf0] }
 0x116   :  { %2447 = vmatmul.bf16.vlgmr.msrb.gmra.mxu1 %v6410_v10  ;;  %v1717_v44 = vadd.f32 %v1716_v43, %v1698_v52  ;;  %2460 = vmatpush.bf16.msrb.mxu2 %v4018_v26  ;;  %v4027_v43 = vld [vmem:[%s6796_s3 + $0x168] sm:$0xf0]  ;;  %v4019_v52 = vld [vmem:[%s6796_s3 + $0x158] sm:$0xf0]  ;;  %v1769_v23 = vadd.f32 %v6372_v38, %v1750_v62 }
 0x117   :  { %2519 = vmatpush.bf16.msra.mxu1 %v3942_v29  ;;  %2433 = vmatmul.bf16.gmra.mxu0 %v6207_v12  ;;  %v1771_v26 = vadd.f32 %v6414_v11, %v1752_v19  ;;  %v4011_v38 = vld [vmem:[%s6796_s3 + $0x148] sm:$0xf0]  ;;  %v4475_v11 = vld [vmem:[%s6796_s3 + $0x134] sm:$0xf] }
 0x118   :  { %2500 = vmatpush.bf16.msra.mxu0 %v3878_v28  ;;  %v1736_v51 = vadd.f32 %v1735_v57, %v1717_v44  ;;  %v4009_v28 = vld [vmem:[%s6796_s3 + $0x140] sm:$0xf]  ;;  %v4030_v57 = vor.u32 %v4481_v60, %v4027_v43 }
 0x119   :  { %v4010_v18 = vor.u32 %v4478_v14, %v4009_v28  ;;  %v4081_v28 = vld [vmem:[%s6796_s3 + $0x1d0] sm:$0xf]  ;;  %v4496_v14 = vld [vmem:[%s6796_s3 + $0x1d4] sm:$0xf0] }
 0x11a   :  { %v2015_v35 = vmax.f32 %v1736_v51, 0.0 }
 0x11b   :  { %2520 = vmatpush.bf16.msra.mxu1 %v3934_v47  ;;  %2461 = vmatpush.bf16.msrb.mxu2 %v4010_v18 }
 0x11c   :  { %2501 = vmatpush.bf16.msra.mxu0 %v3870_v1  ;;  %v6443_v55 = vpop.f32.mrf.mxu2  ;;  %v6445_v63 = vpop.f32.mrf.mxu3  ;;  %v3993_v1 = vld [vmem:[%s6796_s3 + $0x120] sm:$0xf] }
 0x11d   :  { %v1718_v50 = vpop.f32.mrf.mxu0  ;;  %v1737_v17 = vpop.f32.mrf.mxu1  ;;  %v3994_v47 = vor.u32 %v4474_v42, %v3993_v1 }
 0x11e   :  { %v1719_v27 = vadd.f32 %v1718_v50, %v1700_v25  ;;  %v4477_v25 = vld [vmem:[%s6796_s3 + $0x144] sm:$0xf] }
 0x11f   :  { %2521 = vmatpush.bf16.msra.mxu1 %v3926_v9  ;;  %2462 = vmatpush.bf16.msrb.mxu2 %v4002_v30  ;;  %v4014_v51 = vor.u32 %v4477_v25, %v4011_v38 }
 0x120   :  { %2502 = vmatpush.bf16.msra.mxu0 %v3862_v58  ;;  %v1738_v29 = vadd.f32 %v1737_v17, %v1719_v27  ;;  %v4483_v58 = vld [vmem:[%s6796_s3 + $0x174] sm:$0xf]  ;;  %v4090_v17 = vor.u32 %v4498_v24, %v4089_v61  ;;  %v4049_v24 = vld [vmem:[%s6796_s3 + $0x190] sm:$0xf] }
 0x121   :  { %v4038_v32 = vor.u32 %v4483_v58, %v4035_v34  ;;  %v4471_v58 = vld [vmem:[%s6796_s3 + $0x114] sm:$0xf] }
 0x122   :  { %v2019_v36 = vmax.f32 %v1738_v29, 0.0 }
 0x123   :  { %2522 = vmatpush.bf16.msra.mxu1 %v3918_v15  ;;  %2463 = vmatpush.bf16.msrb.mxu2 %v3994_v47  ;;  %v4479_v15 = vld [vmem:[%s6796_s3 + $0x154] sm:$0xf]  ;;  %v4494_v47 = vld [vmem:[%s6796_s3 + $0x1c4] sm:$0xf0] }
 0x124   :  { %2503 = vmatpush.bf16.msra.mxu0 %v3854_v0  ;;  %v6459_v39 = vpop.f32.mrf.mxu2  ;;  %v6461_v40 = vpop.f32.mrf.mxu3  ;;  %v6463_v45 = vpack.c.bf16 %v2019_v36, %v2015_v35  ;;  %v4097_v0 = vld [vmem:[%s6796_s3 + $0x1f0] sm:$0xf]  ;;  %v4022_v44 = vor.u32 %v4479_v15, %v4019_v52  ;;  %v4082_v36 = vor.u32 %v4496_v14, %v4081_v28  ;;  %v4469_v15 = vld [vmem:[%s6796_s3 + $0x104] sm:$0xf]  ;;  %v4041_v28 = vld [vmem:[%s6796_s3 + $0x180] sm:$0xf] }
 0x125   :  { %v1787_v41 = vpop.f32.mrf.mxu0  ;;  %v6465_v56 = vpop.f32.mrf.mxu1 }
 0x126   :  { %2452 = vmatmul.bf16.gmra.mxu1 %v6463_v45  ;;  %v1788_v50 = vadd.f32 %v1787_v41, %v1769_v23  ;;  %v4006_v41 = vor.u32 %v4475_v11, %v4003_v33 }
 0x127   :  { %2504 = vmatmul.bf16.vlgmr.msra.gmra.mxu0 %v6144_v22  ;;  %2464 = vmatpush.bf16.msrb.mxu2 %v3986_v7  ;;  %v3977_v22 = vld [vmem:[%s6796_s3 + $0x100] sm:$0xf] }
 0x128   :  { %v3978_v8 = vor.u32 %v4470_v6, %v3977_v22  ;;  %v1807_v29 = vadd.f32 %v6465_v56, %v1788_v50  ;;  %v4073_v56 = vld [vmem:[%s6796_s3 + $0x1c0] sm:$0xf]  ;;  %v1757_v22 = vadd.f32 %v6459_v39, %v276_v54  ;;  %v4065_v6 = vld [vmem:[%s6796_s3 + $0x1b0] sm:$0xf] }
 0x129   :  { %v4074_v7 = vor.u32 %v4494_v47, %v4073_v56  ;;  %v4497_v47 = vld [vmem:[%s6796_s3 + $0x1e4] sm:$0xf] }
 0x12b   :  { %2465 = vmatpush.bf16.msrb.mxu2 %v3978_v8  ;;  %v4492_v8 = vld [vmem:[%s6796_s3 + $0x1b4] sm:$0xf0] }
 0x12c   :  { %v6481_v2 = vpop.f32.mrf.mxu2  ;;  %v6483_v31 = vpop.f32.mrf.mxu3  ;;  %v4066_v39 = vor.u32 %v4492_v8, %v4065_v6 }
 0x12d   :  { %v1789_v59 = vpop.f32.mrf.mxu0  ;;  %v1808_v16 = vpop.f32.mrf.mxu1  ;;  %v1826_v1 = vadd.f32 %v6481_v2, %v1807_v29 }
 0x12e   :  { %v1790_v27 = vadd.f32 %v1789_v59, %v1771_v26  ;;  %v1755_v59 = vadd.f32 %v6443_v55, %v276_v54 }
 0x12f   :  { %2534 = vmatpush.bf16.msra.mxu2 %v4038_v32  ;;  %v3987_v32 = vld [vmem:[%s6796_s3 + $0x118] sm:$0xf0] }
 0x130   :  { %v1809_v42 = vadd.f32 %v1808_v16, %v1790_v27  ;;  %v1845_v16 = vadd.f32 %v6483_v31, %v1826_v1  ;;  %v3990_v43 = vor.u32 %v4471_v58, %v3987_v32 }
 0x133   :  { %2535 = vmatpush.bf16.msra.mxu2 %v4030_v57  ;;  %v1774_v57 = vadd.f32 %v6445_v63, %v1755_v59  ;;  %v4083_v59 = vld [vmem:[%s6796_s3 + $0x1d8] sm:$0xf0] }
 0x134   :  { %v1827_v9 = vpop.f32.mrf.mxu2  ;;  %v6497_v48 = vpop.f32.mrf.mxu3 }
 0x135   :  { %v6499_v4 = vpop.f32.mrf.mxu0  ;;  %v6501_v13 = vpop.f32.mrf.mxu1  ;;  %v1828_v46 = vadd.f32 %v1827_v9, %v1809_v42 }
 0x136   :  { %2523 = vmatmul.bf16.vlgmr.msra.gmra.mxu1 %v6410_v10  ;;  %v4500_v10 = vld [vmem:[%s6796_s3 + $0x1f4] sm:$0xf0]  ;;  %v1793_v19 = vadd.f32 %v6499_v4, %v1774_v57 }
 0x137   :  { %2509 = vmatmul.bf16.gmra.mxu0 %v6207_v12  ;;  %v4098_v37 = vor.u32 %v4500_v10, %v4097_v0  ;;  %2536 = vmatpush.bf16.msra.mxu2 %v4022_v44  ;;  %v1847_v55 = vadd.f32 %v6497_v48, %v1828_v46  ;;  %v1776_v48 = vadd.f32 %v6461_v40, %v1757_v22  ;;  %v4057_v0 = vld [vmem:[%s6796_s3 + $0x1a0] sm:$0xf]  ;;  %v4490_v10 = vld [vmem:[%s6796_s3 + $0x1a4] sm:$0xf0]  ;;  %v3979_v40 = vld [vmem:[%s6796_s3 + $0x108] sm:$0xf0] }
 0x138   :  { %v4058_v52 = vor.u32 %v4490_v10, %v4057_v0  ;;  %v3982_v44 = vor.u32 %v4469_v15, %v3979_v40  ;;  %v4488_v4 = vld [vmem:[%s6796_s3 + $0x194] sm:$0xf0]  ;;  %v1812_v25 = vadd.f32 %v6501_v13, %v1793_v19  ;;  %v4486_v13 = vld [vmem:[%s6796_s3 + $0x184] sm:$0xf0] }
 0x139   :  { %2477 = vmatpush.bf16.msrb.mxu3 %v4098_v37  ;;  %v4042_v11 = vor.u32 %v4486_v13, %v4041_v28  ;;  %v4485_v28 = vld [vmem:[%s6796_s3 + $0x184] sm:$0xf]  ;;  %v4043_v13 = vld [vmem:[%s6796_s3 + $0x188] sm:$0xf0] }
 0x13b   :  { %2537 = vmatpush.bf16.msra.mxu2 %v4014_v51 }
 0x13c   :  { %v6528_v20 = vpop.f32.mrf.mxu2  ;;  %v6530_v12 = vpop.f32.mrf.mxu3 }
 0x13d   :  { %v6535_v3 = vpop.f32.mrf.mxu0  ;;  %v6537_v5 = vpop.f32.mrf.mxu1  ;;  %2478 = vmatpush.bf16.msrb.mxu3 %v4090_v17  ;;  %v4050_v17 = vor.u32 %v4488_v4, %v4049_v24  ;;  %v1831_v51 = vadd.f32 %v6528_v20, %v1812_v25  ;;  %v4499_v20 = vld [vmem:[%s6796_s3 + $0x1f4] sm:$0xf]  ;;  %v4051_v25 = vld [vmem:[%s6796_s3 + $0x198] sm:$0xf0] }
 0x13e   :  { %v1795_v23 = vadd.f32 %v6535_v3, %v1776_v48  ;;  %v4487_v4 = vld [vmem:[%s6796_s3 + $0x194] sm:$0xf] }
 0x13f   :  { %2538 = vmatpush.bf16.msra.mxu2 %v4006_v41  ;;  %v1850_v29 = vadd.f32 %v6530_v12, %v1831_v51 }
 0x140   :  { %v1814_v27 = vadd.f32 %v6537_v5, %v1795_v23  ;;  %v4099_v5 = vld [vmem:[%s6796_s3 + $0x1f8] sm:$0xf0] }
 0x141   :  { %2479 = vmatpush.bf16.msrb.mxu3 %v4082_v36  ;;  %v4102_v1 = vor.u32 %v4499_v20, %v4099_v5 }
 0x144   :  { %v6563_v18 = vpop.f32.mrf.mxu2  ;;  %v6565_v35 = vpop.f32.mrf.mxu3 }
 0x145   :  { %v1863_v21 = vpop.f32.mrf.mxu0  ;;  %v6570_v30 = vpop.f32.mrf.mxu1  ;;  %2480 = vmatpush.bf16.msrb.mxu3 %v4074_v7  ;;  %v1833_v14 = vadd.f32 %v6563_v18, %v1814_v27  ;;  %v277_v18 = vperm.slane %v6506_v53, 3  ;;  %v4495_v53 = vld [vmem:[%s6796_s3 + $0x1d4] sm:$0xf] }
 0x146   :  { %2528 = vmatmul.bf16.gmra.mxu1 %v6463_v45  ;;  %v3995_v45 = vld [vmem:[%s6796_s3 + $0x128] sm:$0xf0]  ;;  %v1864_v34 = vadd.f32 %v1863_v21, %v1845_v16  ;;  %v4086_v6 = vor.u32 %v4495_v53, %v4083_v59 }
 0x147   :  { %v3998_v2 = vor.u32 %v4473_v49, %v3995_v45  ;;  %v1852_v36 = vadd.f32 %v6565_v35, %v1833_v14  ;;  %v4091_v49 = vld [vmem:[%s6796_s3 + $0x1e8] sm:$0xf0]  ;;  %v1883_v45 = vadd.f32 %v6570_v30, %v277_v18 }
 0x148   :  { %v2008_v63 = vmax.f32 %v1864_v34, 0.0  ;;  %v4094_v7 = vor.u32 %v4497_v47, %v4091_v49  ;;  %v4493_v34 = vld [vmem:[%s6796_s3 + $0x1c4] sm:$0xf] }
 0x149   :  { %2539 = vmatpush.bf16.msra.mxu2 %v3998_v2  ;;  %2481 = vmatpush.bf16.msrb.mxu3 %v4066_v39  ;;  %v4075_v39 = vld [vmem:[%s6796_s3 + $0x1c8] sm:$0xf0] }
 0x14a   :  { %v4078_v32 = vor.u32 %v4493_v34, %v4075_v39  ;;  %v4504_v34 = vld [vmem:[%s6798_s5 + $0x18] sm:$0xff]  ;;  %v4503_v39 = vld [vmem:[%s6798_s5 + $0x10] sm:$0xff] }
 0x14c   :  { %v6599_v31 = vpop.f32.mrf.mxu2  ;;  %v6601_v9 = vpop.f32.mrf.mxu3 }
 0x14d   :  { %v1865_v54 = vpop.f32.mrf.mxu0  ;;  %v6606_v60 = vpop.f32.mrf.mxu1  ;;  %2540 = vmatpush.bf16.msra.mxu2 %v3990_v43  ;;  %2482 = vmatpush.bf16.msrb.mxu3 %v4058_v52  ;;  %v1902_v8 = vadd.f32 %v6599_v31, %v1883_v45  ;;  %v4491_v31 = vld [vmem:[%s6796_s3 + $0x1b4] sm:$0xf] }
 0x14e   :  { %v1866_v62 = vadd.f32 %v1865_v54, %v1847_v55  ;;  %v1885_v55 = vadd.f32 %v6606_v60, %v277_v18  ;;  %v4067_v60 = vld [vmem:[%s6796_s3 + $0x1b8] sm:$0xf0] }
 0x14f   :  { %v1921_v54 = vadd.f32 %v6601_v9, %v1902_v8  ;;  %v4070_v0 = vor.u32 %v4491_v31, %v4067_v60  ;;  %v4489_v9 = vld [vmem:[%s6796_s3 + $0x1a4] sm:$0xf]  ;;  %v4516_v60 = vld [vmem:[%s6798_s5 + $0x78] sm:$0xff] }
 0x150   :  { %v2012_v37 = vmax.f32 %v1866_v62, 0.0  ;;  %2735 = vmatpush.bf16.msrb.mxu1 %v4516_v60 }
 0x151   :  { %2541 = vmatpush.bf16.msra.mxu2 %v3982_v44  ;;  %2483 = vmatpush.bf16.msrb.mxu3 %v4050_v17  ;;  %v4054_v17 = vor.u32 %v4487_v4, %v4051_v25  ;;  %v4511_v4 = vld [vmem:[%s6798_s5 + $0x50] sm:$0xff] }
 0x152   :  { %v6624_v61 = vpack.c.bf16 %v2012_v37, %v2008_v63  ;;  %v4059_v63 = vld [vmem:[%s6796_s3 + $0x1a8] sm:$0xf0] }
 0x153   :  { %v4062_v40 = vor.u32 %v4489_v9, %v4059_v63  ;;  %v4513_v9 = vld [vmem:[%s6798_s5 + $0x60] sm:$0xff] }
 0x154   :  { %v1903_v26 = vpop.f32.mrf.mxu2  ;;  %v1922_v50 = vpop.f32.mrf.mxu3  ;;  %2466 = vmatmul.bf16.vlgmr.msrb.gmra.mxu2 %v6624_v61 }
 0x155   :  { %v1868_v3 = vpop.f32.mrf.mxu0  ;;  %v1887_v38 = vpop.f32.mrf.mxu1  ;;  %2484 = vmatpush.bf16.msrb.mxu3 %v4042_v11  ;;  %v1904_v43 = vadd.f32 %v1903_v26, %v1885_v55  ;;  %v4505_v55 = vld [vmem:[%s6798_s5 + $0x20] sm:$0xff] }
 0x156   :  { %v1869_v33 = vadd.f32 %v1868_v3, %v1850_v29  ;;  %v1888_v44 = vadd.f32 %v1887_v38, %v277_v18  ;;  %v4046_v29 = vor.u32 %v4485_v28, %v4043_v13 }
 0x157   :  { %v1923_v10 = vadd.f32 %v1922_v50, %v1904_v43  ;;  %v4501_v43 = vld [vmem:[%s6798_s5] sm:$0xff] }
 0x158   :  { %v2016_v35 = vmax.f32 %v1869_v33, 0.0 }
 0x159   :  { %2553 = vmatpush.bf16.msra.mxu3 %v4102_v1 }
 0x15c   :  { %v1906_v21 = vpop.f32.mrf.mxu2  ;;  %v6651_v41 = vpop.f32.mrf.mxu3 }
 0x15d   :  { %v1870_v42 = vpop.f32.mrf.mxu0  ;;  %v1889_v12 = vpop.f32.mrf.mxu1  ;;  %2554 = vmatpush.bf16.msra.mxu3 %v4094_v7  ;;  %v1907_v3 = vadd.f32 %v1906_v21, %v1888_v44 }
 0x15e   :  { %v1871_v56 = vadd.f32 %v1870_v42, %v1852_v36  ;;  %v1890_v14 = vadd.f32 %v1889_v12, %v277_v18 }
 0x160   :  { %v2020_v46 = vmax.f32 %v1871_v56, 0.0 }
 0x161   :  { %2555 = vmatpush.bf16.msra.mxu3 %v4086_v6 }
 0x162   :  { %v6661_v2 = vpack.c.bf16 %v2020_v46, %v2016_v35 }
 0x164   :  { %v1908_v16 = vpop.f32.mrf.mxu2  ;;  %v1927_v22 = vpop.f32.mrf.mxu3  ;;  %2471 = vmatmul.bf16.gmra.mxu2 %v6661_v2 }
 0x165   :  { %v1939_v58 = vpop.f32.mrf.mxu0  ;;  %v1958_v30 = vpop.f32.mrf.mxu1  ;;  %2556 = vmatpush.bf16.msra.mxu3 %v4078_v32  ;;  %v1909_v5 = vadd.f32 %v1908_v16, %v1890_v14  ;;  %v4502_v32 = vld [vmem:[%s6798_s5 + $0x8] sm:$0xff] }
 0x166   :  { %v1940_v57 = vadd.f32 %v1939_v58, %v1921_v54 }
 0x167   :  { %v1928_v47 = vadd.f32 %v1927_v22, %v1909_v5  ;;  %v4508_v22 = vld [vmem:[%s6798_s5 + $0x38] sm:$0xff] }
 0x168   :  { %v1959_v37 = vadd.f32 %v1958_v30, %v1940_v57  ;;  %2716 = vmatpush.bf16.msrb.mxu0 %v4508_v22  ;;  %v4507_v30 = vld [vmem:[%s6798_s5 + $0x30] sm:$0xff] }
 0x169   :  { %2557 = vmatpush.bf16.msra.mxu3 %v4070_v0  ;;  %v4514_v0 = vld [vmem:[%s6798_s5 + $0x68] sm:$0xff] }
 0x16c   :  { %v1977_v62 = vpop.f32.mrf.mxu2  ;;  %v1996_v48 = vpop.f32.mrf.mxu3  ;;  %2717 = vmatpush.bf16.msrb.mxu0 %v4507_v30 }
 0x16d   :  { %v1941_v15 = vpop.f32.mrf.mxu0  ;;  %v1960_v19 = vpop.f32.mrf.mxu1  ;;  %v1978_v23 = vadd.f32 %v1977_v62, %v1959_v37  ;;  %2558 = vmatpush.bf16.msra.mxu3 %v4062_v40  ;;  %v4515_v62 = vld [vmem:[%s6798_s5 + $0x70] sm:$0xff] }
 0x16e   :  { %v1942_v52 = vadd.f32 %v1941_v15, %v1923_v10  ;;  %2736 = vmatpush.bf16.msrb.mxu1 %v4515_v62 }
 0x16f   :  { %v1997_v51 = vadd.f32 %v1996_v48, %v1978_v23 }
 0x170   :  { %v1961_v24 = vadd.f32 %v1960_v19, %v1942_v52  ;;  %v2094_v19 = vld [vmem:[%s6799_s4] sm:$0x3]  ;;  %v4512_v52 = vld [vmem:[%s6798_s5 + $0x58] sm:$0xff] }
 0x171   :  { %2559 = vmatpush.bf16.msra.mxu3 %v4054_v17  ;;  %v2009_v36 = vmax.f32 %v1997_v51, 0.0  ;;  %v2096_v63 = vperm.slane %v2094_v19, 0 }
 0x172   :  { %2737 = vmatpush.bf16.msrb.mxu1 %v4514_v0 }
 0x174   :  { %v1979_v26 = vpop.f32.mrf.mxu2  ;;  %v1998_v50 = vpop.f32.mrf.mxu3  ;;  %2542 = vmatmul.bf16.vlgmr.msra.gmra.mxu2 %v6624_v61  ;;  %v1926_v61 = vadd.f32 %v6651_v41, %v1907_v3 }
 0x175   :  { %v1980_v27 = vadd.f32 %v1979_v26, %v1961_v24  ;;  %v1944_v38 = vpop.f32.mrf.mxu0  ;;  %v1963_v20 = vpop.f32.mrf.mxu1  ;;  %2560 = vmatpush.bf16.msra.mxu3 %v4046_v29 }
 0x176   :  { %v1945_v1 = vadd.f32 %v1944_v38, %v1926_v61  ;;  %2738 = vmatpush.bf16.msrb.mxu1 %v4513_v9 }
 0x177   :  { %v1999_v11 = vadd.f32 %v1998_v50, %v1980_v27  ;;  %v4510_v50 = vld [vmem:[%s6798_s5 + $0x48] sm:$0xff] }
 0x178   :  { %v1964_v35 = vadd.f32 %v1963_v20, %v1945_v1 }
 0x179   :  { %v2013_v33 = vmax.f32 %v1999_v11, 0.0  ;;  %v4509_v11 = vld [vmem:[%s6798_s5 + $0x40] sm:$0xff] }
 0x17a   :  { %2739 = vmatpush.bf16.msrb.mxu1 %v4512_v52 }
 0x17b   :  { %v2025_v21 = vpack.c.bf16 %v2013_v33, %v2009_v36 }
 0x17c   :  { %v1982_v42 = vpop.f32.mrf.mxu2  ;;  %v2001_v56 = vpop.f32.mrf.mxu3 }
 0x17d   :  { %2485 = vmatmul.bf16.vlgmr.msrb.gmra.mxu3 %v2025_v21  ;;  %v1946_v49 = vpop.f32.mrf.mxu0  ;;  %v1983_v7 = vadd.f32 %v1982_v42, %v1964_v35  ;;  %v1965_v18 = vpop.f32.mrf.mxu1 }
 0x17e   :  { %v1947_v46 = vadd.f32 %v1946_v49, %v1928_v47  ;;  %4536 = vmatpush.bf16.msrb.mxu3 %v4508_v22  ;;  %2740 = vmatpush.bf16.msrb.mxu1 %v4511_v4 }
 0x17f   :  { %v2002_v41 = vadd.f32 %v2001_v56, %v1983_v7 }
 0x180   :  { %v1966_v12 = vadd.f32 %v1965_v18, %v1947_v46 }
 0x181   :  { %v2017_v6 = vmax.f32 %v2002_v41, 0.0 }
 0x182   :  { %4537 = vmatpush.bf16.msrb.mxu3 %v4507_v30  ;;  %2741 = vmatpush.bf16.msrb.mxu1 %v4510_v50 }
 0x184   :  { %v1984_v45 = vpop.f32.mrf.mxu2  ;;  %2547 = vmatmul.bf16.gmra.mxu2 %v6661_v2  ;;  %v2003_v59 = vpop.f32.mrf.mxu3  ;;  %v4506_v2 = vld [vmem:[%s6798_s5 + $0x28] sm:$0xff] }
 0x185   :  { %v1985_v53 = vadd.f32 %v1984_v45, %v1966_v12  ;;  %2718 = vmatpush.bf16.msrb.mxu0 %v4506_v2  ;;  %v2429_v54 = vpop.f32.mrf.mxu0 }
 0x186   :  { %4538 = vmatpush.bf16.msrb.mxu3 %v4506_v2  ;;  %v2430_v23 = vadd.f32 %v2429_v54, %v2096_v63  ;;  %2742 = vmatpush.bf16.msrb.mxu1 %v4509_v11  ;;  %v4517_v11 = vld [vmem:[%s6801_s7] sm:$0xff] }
 0x187   :  { %v2004_v16 = vadd.f32 %v2003_v59, %v1985_v53  ;;  %v2097_v59 = vperm.slane %v2094_v19, 1 }
 0x189   :  { %v2021_v8 = vmax.f32 %v2004_v16, 0.0  ;;  %2719 = vmatpush.bf16.msrb.mxu0 %v4505_v55 }
 0x18a   :  { %4539 = vmatpush.bf16.msrb.mxu3 %v4505_v55 }
 0x18b   :  { %v2029_v58 = vpack.c.bf16 %v2021_v8, %v2017_v6 }
 0x18d   :  { %2490 = vmatmul.bf16.gmra.mxu3 %v2029_v58  ;;  %2720 = vmatpush.bf16.msrb.mxu0 %v4504_v34  ;;  %v2431_v48 = vpop.f32.mrf.mxu0 }
 0x18e   :  { %4540 = vmatpush.bf16.msrb.mxu3 %v4504_v34  ;;  %v2432_v25 = vadd.f32 %v2431_v48, %v2096_v63 }
 0x191   :  { %2721 = vmatpush.bf16.msrb.mxu0 %v4503_v39 }
 0x192   :  { %4541 = vmatpush.bf16.msrb.mxu3 %v4503_v39 }
 0x193   :  { %v2448_v57 = vpop.f32.mrf.mxu1 }
 0x194   :  { %v2449_v26 = vadd.f32 %v2448_v57, %v2430_v23 }
 0x195   :  { %2722 = vmatpush.bf16.msrb.mxu0 %v4502_v32  ;;  %v2434_v37 = vpop.f32.mrf.mxu0 }
 0x196   :  { %4542 = vmatpush.bf16.msrb.mxu3 %v4502_v32  ;;  %v2435_v33 = vadd.f32 %v2434_v37, %v2096_v63 }
 0x199   :  { %2723 = vmatpush.bf16.msrb.mxu0 %v4501_v43 }
 0x19a   :  { %4543 = vmatpush.bf16.msrb.mxu3 %v4501_v43 }
 0x19b   :  { %v2450_v10 = vpop.f32.mrf.mxu1 }
 0x19c   :  { %v2451_v17 = vadd.f32 %v2450_v10, %v2432_v25 }
 0x19d   :  { %2561 = vmatmul.bf16.vlgmr.msra.gmra.mxu3 %v2025_v21  ;;  %v2436_v38 = vpop.f32.mrf.mxu0 }
 0x19e   :  { %v2437_v1 = vadd.f32 %v2436_v38, %v2096_v63  ;;  %v4521_v38 = vld [vmem:[%s6801_s7 + $0x20] sm:$0xff] }
 0x1a3   :  { %v2453_v40 = vpop.f32.mrf.mxu1 }
 0x1a4   :  { %v2454_v42 = vadd.f32 %v2453_v40, %v2435_v33 }
 0x1a5   :  { %v2505_v21 = vpop.f32.mrf.mxu0 }
 0x1a6   :  { %v2506_v22 = vadd.f32 %v2505_v21, %v2097_v59 }
 0x1ab   :  { %v2455_v14 = vpop.f32.mrf.mxu1 }
 0x1ac   :  { %v2456_v47 = vadd.f32 %v2455_v14, %v2437_v1  ;;  %v4518_v14 = vld [vmem:[%s6801_s7 + $0x8] sm:$0xff] }
 0x1ad   :  { %2566 = vmatmul.bf16.gmra.mxu3 %v2029_v58  ;;  %v2507_v53 = vpop.f32.mrf.mxu0 }
 0x1ae   :  { %v2508_v30 = vadd.f32 %v2507_v53, %v2097_v59 }
 0x1b3   :  { %v2524_v56 = vpop.f32.mrf.mxu1 }
 0x1b4   :  { %v2525_v2 = vadd.f32 %v2524_v56, %v2506_v22 }
 0x1b5   :  { %v2510_v39 = vpop.f32.mrf.mxu0 }
 0x1b6   :  { %v2511_v19 = vadd.f32 %v2510_v39, %v2097_v59 }
 0x1bb   :  { %v2526_v6 = vpop.f32.mrf.mxu1 }
 0x1bc   :  { %v2527_v55 = vadd.f32 %v2526_v6, %v2508_v30 }
 0x1bd   :  { %v2512_v10 = vpop.f32.mrf.mxu0 }
 0x1be   :  { %v2513_v63 = vadd.f32 %v2512_v10, %v2097_v59 }
 0x1c3   :  { %v2529_v43 = vpop.f32.mrf.mxu1 }
 0x1c4   :  { %v2530_v37 = vadd.f32 %v2529_v43, %v2511_v19 }
 0x1cb   :  { %v2531_v9 = vpop.f32.mrf.mxu1 }
 0x1cc   :  { %v2532_v40 = vadd.f32 %v2531_v9, %v2513_v63 }
 0x1d7   :  { %v2467_v31 = vpop.f32.mrf.mxu2 }
 0x1d8   :  { %v2468_v3 = vadd.f32 %v2467_v31, %v2449_v26 }
 0x1df   :  { %v2469_v15 = vpop.f32.mrf.mxu2 }
 0x1e0   :  { %v2470_v51 = vadd.f32 %v2469_v15, %v2451_v17 }
 0x1e7   :  { %v2472_v24 = vpop.f32.mrf.mxu2 }
 0x1e8   :  { %v2473_v49 = vadd.f32 %v2472_v24, %v2454_v42 }
 0x1ef   :  { %v2474_v61 = vpop.f32.mrf.mxu2 }
 0x1f0   :  { %v2475_v46 = vadd.f32 %v2474_v61, %v2456_v47  ;;  %v4544_v61 = vld [vmem:[%s6797_s6] ss:$0 sm:$0xff] }
 0x1f7   :  { %v2543_v35 = vpop.f32.mrf.mxu2 }
 0x1f8   :  { %v2544_v34 = vadd.f32 %v2543_v35, %v2525_v2 }
 0x1ff   :  { %v2545_v8 = vpop.f32.mrf.mxu2 }
 0x200   :  { %v2486_v44 = vpop.f32.mrf.mxu3  ;;  %v2546_v32 = vadd.f32 %v2545_v8, %v2527_v55  ;;  %v4545_v8 = vld [vmem:[%s6800_s8] ss:$0 sm:$0xff] }
 0x201   :  { %v2487_v27 = vadd.f32 %v2486_v44, %v2468_v3  ;;  %v4524_v3 = vld [vmem:[%s6801_s7 + $0x38] sm:$0xff] }
 0x202   :  { %2828 = vmatpush.bf16.msrb.mxu2 %v4524_v3 }
 0x203   :  { %v2572_v29 = vmax.f32 %v2487_v27, 0.0  ;;  %v4522_v27 = vld [vmem:[%s6801_s7 + $0x28] sm:$0xff] }
 0x207   :  { %v2548_v60 = vpop.f32.mrf.mxu2 }
 0x208   :  { %v2488_v28 = vpop.f32.mrf.mxu3  ;;  %v2549_v44 = vadd.f32 %v2548_v60, %v2530_v37 }
 0x209   :  { %v2489_v13 = vadd.f32 %v2488_v28, %v2470_v51  ;;  %v4523_v51 = vld [vmem:[%s6801_s7 + $0x30] sm:$0xff]  ;;  %v4520_v28 = vld [vmem:[%s6801_s7 + $0x18] sm:$0xff] }
 0x20a   :  { %2829 = vmatpush.bf16.msrb.mxu2 %v4523_v51 }
 0x20b   :  { %v2574_v20 = vmax.f32 %v2489_v13, 0.0  ;;  %v4519_v13 = vld [vmem:[%s6801_s7 + $0x10] sm:$0xff] }
 0x20d   :  { %v2580_v5 = vpack.c.bf16 %v2574_v20, %v2572_v29 }
 0x20e   :  { %2830 = vmatpush.bf16.msrb.mxu2 %v4522_v27 }
 0x20f   :  { %2724 = vmatmul.bf16.vlgmr.msrb.gmra.mxu0 %v2580_v5  ;;  %v2550_v52 = vpop.f32.mrf.mxu2 }
 0x210   :  { %v2491_v36 = vpop.f32.mrf.mxu3  ;;  %v2551_v23 = vadd.f32 %v2550_v52, %v2532_v40 }
 0x211   :  { %v2492_v7 = vadd.f32 %v2491_v36, %v2473_v49 }
 0x212   :  { %2831 = vmatpush.bf16.msrb.mxu2 %v4521_v38 }
 0x213   :  { %v2576_v45 = vmax.f32 %v2492_v7, 0.0 }
 0x216   :  { %2832 = vmatpush.bf16.msrb.mxu2 %v4520_v28 }
 0x218   :  { %v2493_v18 = vpop.f32.mrf.mxu3 }
 0x219   :  { %v2494_v12 = vadd.f32 %v2493_v18, %v2475_v46 }
 0x21a   :  { %2833 = vmatpush.bf16.msrb.mxu2 %v4519_v13 }
 0x21b   :  { %v2578_v41 = vmax.f32 %v2494_v12, 0.0 }
 0x21d   :  { %v2582_v16 = vpack.c.bf16 %v2578_v41, %v2576_v45 }
 0x21e   :  { %2834 = vmatpush.bf16.msrb.mxu2 %v4518_v14 }
 0x21f   :  { %2729 = vmatmul.bf16.vlgmr.msrb.gmra.mxu3 %v2582_v16 }
 0x220   :  { %v2562_v58 = vpop.f32.mrf.mxu3 }
 0x221   :  { %v2563_v54 = vadd.f32 %v2562_v58, %v2544_v34 }
 0x222   :  { %2835 = vmatpush.bf16.msrb.mxu2 %v4517_v11 }
 0x223   :  { %v2573_v62 = vmax.f32 %v2563_v54, 0.0 }
 0x228   :  { %v2564_v57 = vpop.f32.mrf.mxu3 }
 0x229   :  { %v2565_v31 = vadd.f32 %v2564_v57, %v2546_v32 }
 0x22b   :  { %v2575_v48 = vmax.f32 %v2565_v31, 0.0 }
 0x22d   :  { %v2581_v0 = vpack.c.bf16 %v2575_v48, %v2573_v62 }
 0x22f   :  { %2743 = vmatmul.bf16.vlgmr.msrb.gmra.mxu1 %v2581_v0 }
 0x230   :  { %v2567_v15 = vpop.f32.mrf.mxu3 }
 0x231   :  { %v2568_v24 = vadd.f32 %v2567_v15, %v2549_v44 }
 0x233   :  { %v2577_v26 = vmax.f32 %v2568_v24, 0.0 }
 0x238   :  { %v2569_v4 = vpop.f32.mrf.mxu3 }
 0x239   :  { %v2570_v25 = vadd.f32 %v2569_v4, %v2551_v23 }
 0x23b   :  { %v2579_v50 = vmax.f32 %v2570_v25, 0.0 }
 0x23d   :  { %v2583_v17 = vpack.c.bf16 %v2579_v50, %v2577_v26 }
 0x23f   :  { %2748 = vmatmul.bf16.gmra.mxu1 %v2583_v17 }
 0x28c   :  { %v2725_v29 = vpop.f32.mrf.mxu0 }
 0x28d   :  { %v2726_v36 = vadd.f32 %v4544_v61, %v2725_v29 }
 0x294   :  { %v2727_v5 = vpop.f32.mrf.mxu0 }
 0x295   :  { %v2728_v33 = vadd.f32 %v4544_v61, %v2727_v5 }
 0x2a2   :  { %v2730_v56 = vpop.f32.mrf.mxu3 }
 0x2a3   :  { %v2731_v18 = vadd.f32 %v4544_v61, %v2730_v56 }
 0x2aa   :  { %v2732_v7 = vpop.f32.mrf.mxu3 }
 0x2ab   :  { %v2733_v12 = vadd.f32 %v4544_v61, %v2732_v7 }
 0x2ac   :  { %v2744_v20 = vpop.f32.mrf.mxu1 }
 0x2ad   :  { %v2745_v21 = vadd.f32 %v2744_v20, %v2726_v36 }
 0x2af   :  { %v2754_v47 = vmax.f32 %v2745_v21, 0.0 }
 0x2b4   :  { %v2746_v1 = vpop.f32.mrf.mxu1 }
 0x2b5   :  { %v2747_v42 = vadd.f32 %v2746_v1, %v2728_v33 }
 0x2b7   :  { %v2755_v49 = vmax.f32 %v2747_v42, 0.0 }
 0x2b9   :  { %v2758_v35 = vpack.c.bf16 %v2755_v49, %v2754_v47 }
 0x2bb   :  { %2836 = vmatmul.bf16.vlgmr.msrb.gmra.mxu2 %v2758_v35 }
 0x2bc   :  { %v2749_v46 = vpop.f32.mrf.mxu1 }
 0x2bd   :  { %v2750_v45 = vadd.f32 %v2749_v46, %v2731_v18 }
 0x2bf   :  { %v2756_v59 = vmax.f32 %v2750_v45, 0.0 }
 0x2c4   :  { %v2751_v41 = vpop.f32.mrf.mxu1 }
 0x2c5   :  { %v2752_v53 = vadd.f32 %v2751_v41, %v2733_v12 }
 0x2c7   :  { %v2757_v16 = vmax.f32 %v2752_v53, 0.0 }
 0x2c9   :  { %v2759_v6 = vpack.c.bf16 %v2757_v16, %v2756_v59 }
 0x2cb   :  { %2841 = vmatmul.bf16.gmra.mxu2 %v2759_v6 }
 0x33e   :  { %v2837_v58 = vpop.f32.mrf.mxu2 }
 0x33f   :  { %v2838_v22 = vadd.f32 %v4545_v8, %v2837_v58 }
 0x341   :  { %2847 = vmax.xlane.f32.xlu0 %v2838_v22 }
 0x346   :  { %v2839_v30 = vpop.f32.mrf.mxu2 }
 0x347   :  { %v2840_v2 = vadd.f32 %v4545_v8, %v2839_v30 }
 0x349   :  { %2849 = vmax.xlane.f32.xlu0 %v2840_v2 }
 0x34e   :  { %v2842_v55 = vpop.f32.mrf.mxu2 }
 0x34f   :  { %v2843_v34 = vadd.f32 %v4545_v8, %v2842_v55 }
 0x351   :  { %2851 = vmax.xlane.f32.xlu1 %v2843_v34 }
 0x356   :  { %v2844_v39 = vpop.f32.mrf.mxu2 }
 0x357   :  { %v2845_v32 = vadd.f32 %v4545_v8, %v2844_v39 }
 0x359   :  { %2853 = vmax.xlane.f32.xlu1 %v2845_v32 }
 0x3b4   :  { %v2848_v54 = vpop.xlane.xlu0 %2847 }
 0x3b5   :  { %v2855_v43 = vsub.f32 %v2838_v22, %v2848_v54 }
 0x3b7   :  { %v2859_v57 = vmul.f32 1.442695, %v2855_v43 }
 0x3b9   :  { %4546 = vpow2.f32 %v2859_v57 }
 0x3bc   :  { %v2850_v31 = vpop.xlane.xlu0 %2849 }
 0x3bd   :  { %v2856_v60 = vsub.f32 %v2840_v2, %v2850_v31 }
 0x3bf   :  { %v4547_v62 = vpop.eup %4546  ;;  %v2861_v48 = vmul.f32 1.442695, %v2856_v60 }
 0x3c0   :  { %2867 = vadd.xlane.f32.xlu2 %v4547_v62 }
 0x3c1   :  { %4548 = vpow2.f32 %v2861_v48 }
 0x3c4   :  { %v2852_v0 = vpop.xlane.xlu1 %2851 }
 0x3c5   :  { %v2857_v10 = vsub.f32 %v2843_v34, %v2852_v0 }
 0x3c7   :  { %v4549_v15 = vpop.eup %4548  ;;  %v2863_v19 = vmul.f32 1.442695, %v2857_v10 }
 0x3c8   :  { %2869 = vadd.xlane.f32.xlu2 %v4549_v15 }
 0x3c9   :  { %4550 = vpow2.f32 %v2863_v19 }
 0x3cc   :  { %v2854_v9 = vpop.xlane.xlu1 %2853 }
 0x3cd   :  { %v2858_v63 = vsub.f32 %v2845_v32, %v2854_v9 }
 0x3cf   :  { %v4551_v37 = vpop.eup %4550  ;;  %v2865_v52 = vmul.f32 1.442695, %v2858_v63 }
 0x3d0   :  { %2871 = vadd.xlane.f32.xlu0 %v4551_v37 }
 0x3d1   :  { %4552 = vpow2.f32 %v2865_v52 }
 0x3d7   :  { %v4553_v40 = vpop.eup %4552 }
 0x3d8   :  { %2873 = vadd.xlane.f32.xlu1 %v4553_v40 }
 0x433   :  { %v2868_v44 = vpop.xlane.xlu2 %2867 }
 0x434   :  { %4554 = vrcp.f32 %v2868_v44 }
 0x43a   :  { %v4555_v24 = vpop.eup %4554 }
 0x43b   :  { %v2870_v23 = vpop.xlane.xlu2 %2869  ;;  %v2879_v25 = vmul.f32 %v4555_v24, %v4547_v62 }
 0x43c   :  { %4556 = vrcp.f32 %v2870_v23 }
 0x442   :  { %v4557_v4 = vpop.eup %4556 }
 0x443   :  { %v2880_v26 = vmul.f32 %v4557_v4, %v4549_v15  ;;  %v2872_v17 = vpop.xlane.xlu0 %2871 }
 0x444   :  { %4558 = vrcp.f32 %v2872_v17 }
 0x445   :  { %v4528_v50 = vpack.c.bf16 %v2880_v26, %v2879_v25 }
 0x447   :  { %4529 = vst [vmem:[%s6802_s9] sm:$0xff] %v4528_v50  }
 0x44a   :  { %v4559_v51 = vpop.eup %4558 }
 0x44b   :  { %v2874_v3 = vpop.xlane.xlu1 %2873  ;;  %v2881_v38 = vmul.f32 %v4559_v51, %v4551_v37 }
 0x44c   :  { %4560 = vrcp.f32 %v2874_v3 }
 0x452   :  { %v4561_v27 = vpop.eup %4560 }
 0x453   :  { %v2882_v28 = vmul.f32 %v4561_v27, %v4553_v40 }
 0x455   :  { %v4533_v13 = vpack.c.bf16 %v2882_v28, %v2881_v38 }
 0x457   :  { %4535 = vst [vmem:[%s6802_s9 + $0x8] sm:$0xff] %v4533_v13  }

</bundles_post_ra>
